<compile_context>
chip_gen: v7x
topology: tpu7x:2x2x1
jax: 0.10.0
libtpu: 0.0.40
codegen_flags: <defaults>
</compile_context>

<pallas_src>
import jax
import jax.numpy as jnp
from jax.experimental import pallas as pl
from jax.experimental.pallas import tpu as pltpu

IN_DIM = 512
HID_DIM = 512
OUT_DIM = 10
OUT_PAD = 128          # lane-dense padded output width
TILE_B = 8             # batch rows per grid step (sublane-aligned)


def mlp_kernel(h_ref, w1_ref, b1_ref, w2_ref, b2_ref, w3_ref, b3_ref, o_ref):
    """Fused 3-layer MLP for one batch tile.

    h_ref:  (TILE_B, 512)
    w1_ref: (512, 512)   b1_ref: (1, 512)
    w2_ref: (512, 512)   b2_ref: (1, 512)
    w3_ref: (512, 128)   b3_ref: (1, 128)   (cols >= 10 are zero padding)
    o_ref:  (TILE_B, 128)
    """
    x = h_ref[...]
    h1 = jnp.maximum(
        jnp.dot(x, w1_ref[...], preferred_element_type=jnp.float32) + b1_ref[...], 0.0)
    h2 = jnp.maximum(
        jnp.dot(h1, w2_ref[...], preferred_element_type=jnp.float32) + b2_ref[...], 0.0)
    o_ref[...] = jnp.dot(h2, w3_ref[...], preferred_element_type=jnp.float32) + b3_ref[...]


@jax.jit
def label_predictor(h, params):
    """Pallas forward pass of LabelPredictor. h: (N, 512) float32 -> (N, 10)."""
    w1, b1, w2, b2, w3p, b3p = params
    n = h.shape[0]
    n_pad = ((n + TILE_B - 1) // TILE_B) * TILE_B
    if n_pad != n:
        h = jnp.pad(h, ((0, n_pad - n), (0, 0)))

    out = pl.pallas_call(
        mlp_kernel,
        out_shape=jax.ShapeDtypeStruct((n_pad, OUT_PAD), jnp.float32),
        grid=(n_pad // TILE_B,),
        in_specs=[
            pl.BlockSpec((TILE_B, IN_DIM), lambda i: (i, 0)),
            pl.BlockSpec((IN_DIM, HID_DIM), lambda i: (0, 0)),
            pl.BlockSpec((1, HID_DIM), lambda i: (0, 0)),
            pl.BlockSpec((HID_DIM, HID_DIM), lambda i: (0, 0)),
            pl.BlockSpec((1, HID_DIM), lambda i: (0, 0)),
            pl.BlockSpec((HID_DIM, OUT_PAD), lambda i: (0, 0)),
            pl.BlockSpec((1, OUT_PAD), lambda i: (0, 0)),
        ],
        out_specs=pl.BlockSpec((TILE_B, OUT_PAD), lambda i: (i, 0)),
        compiler_params=pltpu.CompilerParams(dimension_semantics=("parallel",)),
    )(h, w1, b1, w2, b2, w3p, b3p)

    return out[:n, :OUT_DIM]


def init_params(key):
    """PyTorch-style Linear init; weights stored as (in, out) for the kernel."""
    def linear(key, fan_in, fan_out):
        k1, k2 = jax.random.split(key)
        bound = 1.0 / (fan_in ** 0.5)
        w = jax.random.uniform(k1, (fan_in, fan_out), jnp.float32, -bound, bound)
        b = jax.random.uniform(k2, (1, fan_out), jnp.float32, -bound, bound)
        return w, b

    k1, k2, k3 = jax.random.split(key, 3)
    w1, b1 = linear(k1, IN_DIM, HID_DIM)
    w2, b2 = linear(k2, HID_DIM, HID_DIM)
    w3, b3 = linear(k3, HID_DIM, OUT_DIM)

    # Pad last layer to 128 output lanes (zero columns) for lane-dense stores.
    w3p = jnp.pad(w3, ((0, 0), (0, OUT_PAD - OUT_DIM)))
    b3p = jnp.pad(b3, ((0, 0), (0, OUT_PAD - OUT_DIM)))
    return (w1, b1, w2, b2, w3p, b3p)


def reference(h, params):
    """Pure-JAX reference mirroring the PyTorch forward."""
    w1, b1, w2, b2, w3p, b3p = params
    x = jnp.maximum(h @ w1 + b1, 0.0)
    x = jnp.maximum(x @ w2 + b2, 0.0)
    return (x @ w3p + b3p)[:, :OUT_DIM]


if __name__ == "__main__":
    key = jax.random.PRNGKey(0)
    params = init_params(key)
    h = jax.random.normal(jax.random.fold_in(key, 123), (16, IN_DIM), jnp.float32)

    out = jax.block_until_ready(label_predictor(h, params))
    assert out.shape == (16, OUT_DIM), out.shape

    ref = jax.block_until_ready(reference(h, params))
    assert jnp.allclose(out, ref, rtol=2e-2, atol=2e-2), float(jnp.max(jnp.abs(out - ref)))

    print("KERNEL_OK")
</pallas_src>

<mosaic_0001>
module attributes {stable_mosaic.version = 11 : i64} {
  func.func @mlp_kernel(%arg0: i32, %arg1: memref<8x512xf32, #tpu.memory_space<vmem>>, %arg2: memref<512x512xf32, #tpu.memory_space<vmem>>, %arg3: memref<1x512xf32, #tpu.memory_space<vmem>>, %arg4: memref<512x512xf32, #tpu.memory_space<vmem>>, %arg5: memref<1x512xf32, #tpu.memory_space<vmem>>, %arg6: memref<512x128xf32, #tpu.memory_space<vmem>>, %arg7: memref<1x128xf32, #tpu.memory_space<vmem>>, %arg8: memref<8x128xf32, #tpu.memory_space<vmem>>) attributes {dimension_semantics = [#tpu.dimension_semantics<parallel>], iteration_bounds = array<i64: 2>, scalar_prefetch = 0 : i64, scratch_operands = 0 : i64, tpu.core_type = #tpu.core_type<tc>, window_params = [{transform_indices = @transform_0, window_bounds = array<i64: 8, 512>}, {pipeline_mode = #tpu.pipeline_mode<synchronous>, transform_indices = @transform_1, window_bounds = array<i64: 512, 512>}, {pipeline_mode = #tpu.pipeline_mode<synchronous>, transform_indices = @transform_2, window_bounds = array<i64: 1, 512>}, {pipeline_mode = #tpu.pipeline_mode<synchronous>, transform_indices = @transform_3, window_bounds = array<i64: 512, 512>}, {pipeline_mode = #tpu.pipeline_mode<synchronous>, transform_indices = @transform_4, window_bounds = array<i64: 1, 512>}, {pipeline_mode = #tpu.pipeline_mode<synchronous>, transform_indices = @transform_5, window_bounds = array<i64: 512, 128>}, {pipeline_mode = #tpu.pipeline_mode<synchronous>, transform_indices = @transform_6, window_bounds = array<i64: 1, 128>}, {transform_indices = @transform_7, window_bounds = array<i64: 8, 128>}]} {
    %c0 = arith.constant 0 : index
    %c0_0 = arith.constant 0 : index
    %0 = vector.load %arg1[%c0, %c0_0] : memref<8x512xf32, #tpu.memory_space<vmem>>, vector<8x512xf32>
    %c0_1 = arith.constant 0 : index
    %c0_2 = arith.constant 0 : index
    %1 = vector.load %arg2[%c0_1, %c0_2] : memref<512x512xf32, #tpu.memory_space<vmem>>, vector<512x512xf32>
    %cst = arith.constant dense<0.000000e+00> : vector<8x512xf32>
    %2 = tpu.matmul %0, %1, %cst {dimension_numbers = #tpu.dot_dimension_numbers<[1], [0], [0], [1], [0, 0, 1, 1], [], []>} : vector<8x512xf32>, vector<512x512xf32>, vector<8x512xf32> -> vector<8x512xf32>
    %c0_3 = arith.constant 0 : index
    %c0_4 = arith.constant 0 : index
    %3 = vector.load %arg3[%c0_3, %c0_4] : memref<1x512xf32, #tpu.memory_space<vmem>>, vector<1x512xf32>
    %4 = vector.broadcast %3 : vector<1x512xf32> to vector<8x512xf32>
    %5 = arith.addf %2, %4 : vector<8x512xf32>
    %cst_5 = arith.constant 0.000000e+00 : f32
    %6 = vector.broadcast %cst_5 : f32 to vector<8x512xf32>
    %7 = arith.maximumf %5, %6 : vector<8x512xf32>
    %c0_6 = arith.constant 0 : index
    %c0_7 = arith.constant 0 : index
    %8 = vector.load %arg4[%c0_6, %c0_7] : memref<512x512xf32, #tpu.memory_space<vmem>>, vector<512x512xf32>
    %cst_8 = arith.constant dense<0.000000e+00> : vector<8x512xf32>
    %9 = tpu.matmul %7, %8, %cst_8 {dimension_numbers = #tpu.dot_dimension_numbers<[1], [0], [0], [1], [0, 0, 1, 1], [], []>} : vector<8x512xf32>, vector<512x512xf32>, vector<8x512xf32> -> vector<8x512xf32>
    %c0_9 = arith.constant 0 : index
    %c0_10 = arith.constant 0 : index
    %10 = vector.load %arg5[%c0_9, %c0_10] : memref<1x512xf32, #tpu.memory_space<vmem>>, vector<1x512xf32>
    %11 = vector.broadcast %10 : vector<1x512xf32> to vector<8x512xf32>
    %12 = arith.addf %9, %11 : vector<8x512xf32>
    %cst_11 = arith.constant 0.000000e+00 : f32
    %13 = vector.broadcast %cst_11 : f32 to vector<8x512xf32>
    %14 = arith.maximumf %12, %13 : vector<8x512xf32>
    %c0_12 = arith.constant 0 : index
    %c0_13 = arith.constant 0 : index
    %15 = vector.load %arg6[%c0_12, %c0_13] : memref<512x128xf32, #tpu.memory_space<vmem>>, vector<512x128xf32>
    %cst_14 = arith.constant dense<0.000000e+00> : vector<8x128xf32>
    %16 = tpu.matmul %14, %15, %cst_14 {dimension_numbers = #tpu.dot_dimension_numbers<[1], [0], [0], [1], [0, 0, 1, 1], [], []>} : vector<8x512xf32>, vector<512x128xf32>, vector<8x128xf32> -> vector<8x128xf32>
    %c0_15 = arith.constant 0 : index
    %c0_16 = arith.constant 0 : index
    %17 = vector.load %arg7[%c0_15, %c0_16] : memref<1x128xf32, #tpu.memory_space<vmem>>, vector<1x128xf32>
    %18 = vector.broadcast %17 : vector<1x128xf32> to vector<8x128xf32>
    %19 = arith.addf %16, %18 : vector<8x128xf32>
    %c0_17 = arith.constant 0 : index
    %c0_18 = arith.constant 0 : index
    %20 = vector.load %arg8[%c0_17, %c0_18] : memref<8x128xf32, #tpu.memory_space<vmem>>, vector<8x128xf32>
    tpu.vector_store %arg8[%c0_17, %c0_18], %19 {strides = array<i32>} : memref<8x128xf32, #tpu.memory_space<vmem>>, vector<8x128xf32>,
    return
  }
  func.func @transform_0(%arg0: i32) -> (i32, i32) {
    %c0_i32 = arith.constant 0 : i32
    %c0_i32_0 = arith.constant 0 : i32
    return %arg0, %c0_i32 : i32, i32
  }
  func.func @transform_1(%arg0: i32) -> (i32, i32) {
    %c0_i32 = arith.constant 0 : i32
    %c0_i32_0 = arith.constant 0 : i32
    %c0_i32_1 = arith.constant 0 : i32
    return %c0_i32, %c0_i32_0 : i32, i32
  }
  func.func @transform_2(%arg0: i32) -> (i32, i32) {
    %c0_i32 = arith.constant 0 : i32
    %c0_i32_0 = arith.constant 0 : i32
    %c0_i32_1 = arith.constant 0 : i32
    return %c0_i32, %c0_i32_0 : i32, i32
  }
  func.func @transform_3(%arg0: i32) -> (i32, i32) {
    %c0_i32 = arith.constant 0 : i32
    %c0_i32_0 = arith.constant 0 : i32
    %c0_i32_1 = arith.constant 0 : i32
    return %c0_i32, %c0_i32_0 : i32, i32
  }
  func.func @transform_4(%arg0: i32) -> (i32, i32) {
    %c0_i32 = arith.constant 0 : i32
    %c0_i32_0 = arith.constant 0 : i32
    %c0_i32_1 = arith.constant 0 : i32
    return %c0_i32, %c0_i32_0 : i32, i32
  }
  func.func @transform_5(%arg0: i32) -> (i32, i32) {
    %c0_i32 = arith.constant 0 : i32
    %c0_i32_0 = arith.constant 0 : i32
    %c0_i32_1 = arith.constant 0 : i32
    return %c0_i32, %c0_i32_0 : i32, i32
  }
  func.func @transform_6(%arg0: i32) -> (i32, i32) {
    %c0_i32 = arith.constant 0 : i32
    %c0_i32_0 = arith.constant 0 : i32
    %c0_i32_1 = arith.constant 0 : i32
    return %c0_i32, %c0_i32_0 : i32, i32
  }
  func.func @transform_7(%arg0: i32) -> (i32, i32) {
    %c0_i32 = arith.constant 0 : i32
    %c0_i32_0 = arith.constant 0 : i32
    return %arg0, %c0_i32 : i32, i32
  }
}

</mosaic_0001>

<bundles_post_ra>
// kernel: label_predictor.1
= control target key start
LH: loop header
LB: loop body
LE: loop exit
PB: predicated region body
PF: predicated region fallthrough
CT: control target
= control target key end

     0   :  { %12 = vsyncpa [#allocation3], 0  ;;  %s3104_s0 = inlined_call_operand.hbm [shape: f32[16,512], index: 0, kind: input, shape index: {}]   ;;  %s3105_s1 = inlined_call_operand.hbm [shape: f32[512,512], index: 1, kind: input, shape index: {}]   ;;  %s3106_s2 = inlined_call_operand.vmem [shape: f32[1,512], index: 2, kind: input, shape index: {}]   ;;  %s3107_s3 = inlined_call_operand.hbm [shape: f32[512,512], index: 3, kind: input, shape index: {}]   ;;  %s3108_s4 = inlined_call_operand.vmem [shape: f32[1,512], index: 4, kind: input, shape index: {}]   ;;  %s3109_s5 = inlined_call_operand.hbm [shape: f32[512,128], index: 5, kind: input, shape index: {}]   ;;  %s3110_s6 = inlined_call_operand.vmem [shape: f32[1,128], index: 6, kind: input, shape index: {}]   ;;  %s3111_s7 = inlined_call_operand.hbm [shape: f32[16,128], index: 7, kind: output, shape index: {}]  }
   0x1   :  { %14 = vsyncpa [#allocation3 + $0x1], 0 }
   0x2   :  { %15 = vsyncpa [#allocation6], 0 }
   0x3   :  { %16 = vsyncpa [#allocation9], 0 }
   0x4   :  { %17 = vsyncpa [#allocation4], 0 }
   0x5   :  { %19 = vsyncpa [#allocation4 + $0x1], 0  ;;  %s2803_s24 = smov 0   ;;  %s2805_s25 = smov 0  }
   0x6   :  { %s2807_s26 = smov 0   ;;  %s2809_s27 = smov 0  }
   0x7 LB: > { %s2824_s28 = sadd.s32 4294967295, %s2752_s27   ;;  %s1800_s29 = sadd.s32 4294967294, %s2752_s27   ;;  %s2752_s27 = sphi %s2809_s27, %s3137_s27   ;;  %s2748_s26 = sphi %s2807_s26, %s3136_s26   ;;  %s2744_s25 = sphi %s2805_s25, %s3135_s25   ;;  %s2740_s24 = sphi %s2803_s24, %s3134_s24  }
   0x8   : > { %p45_p0 = scmp.ne.s32.totalorder %s2744_s25, %s2740_s24  ;;  %p3112_p1 = scmp.eq.s32.totalorder %s2824_s28, 0 }
   0x9   : > { %p201_p3 = scmp.eq.s32.totalorder %s1800_s29, 1  ;;  %p1801_p5 = scmp.ge.s32.totalorder %s2752_s27, 1 }
   0xa   : > { %p2833_p4 = por %p3112_p1, %p45_p0  ;;  %p208_p7 = scmp.lt.s32.totalorder %s2752_s27, 3 }
   0xb   : > { %p2838_p6 = por %p201_p3, %p45_p0  ;;  %s2754_s10 = smov [#allocation5]  }
   0xc   : > { %s3116_s30 = scalar_select %p2833_p4, 1, 0 }
   0xd   : > { %s3117_s8 = scalar_select %p2838_p6, 1, 0 }
   0xe   : > { %p2843_p8 = pnand %p1801_p5, %p208_p7  ;;  %s220_s11 = sshll.u32 %s2754_s10, 4  ;;  %s2847_s11 = int_to_ptr.vmem [resolvable:$true] %s220_s11 }
   0xf   : > { %3118 = sst [smem:[#allocation15_spill]] %s3117_s8  ;;  %s2755_s13 = smov [#allocation7]  }
  0x10   : > { %s3119_s9 = scalar_select %p2843_p8, 1, 0 }
  0x11   : > { %p2499_p9 = pneg %p2843_p8  ;;  %s236_s14 = sshll.u32 %s2755_s13, 4  ;;  %s2858_s14 = int_to_ptr.vmem [resolvable:$true] %s236_s14 }
  0x12   : > { %s2756_s15 = smov [#allocation8]   ;;  %s2564_s19 = scalar_lea.hbm %s3105_s1, 32768 }
  0x13   : > { %p2854_p11 = pnand %p2499_p9, %p3112_p1  ;;  %s2860_s16 = sshll.u32 %s2756_s15, 4  ;;  %s253_s16 = int_to_ptr.vmem [resolvable:$true] %s2860_s16 }
  0x14   : > { %p2565_p12 = scmp.ne.s32.totalorder %s3105_s1, %s2564_s19  ;;  %p2571_p5 = scmp.lt.u32.totalorder %s2564_s19, %s3105_s1 }
  0x15   : > { %p2870_p13 = pneg %p2854_p11 }
  0x17   : > { %p2567_p0 = pnand %p2870_p13, %p2565_p12 }
  0x19   : > { %p2568_p3 = pneg %p2567_p0 }
  0x1b   : > { %p2573_p7 = pnand %p2571_p5, %p2568_p3 }
  0x1d   : > { %2576 = shalt.err (!%p2573_p7)
}
  0x1e   : > { %s2577_s10 = scalar_lea.vmem %s2847_s11, 32768  ;;  %p2585_p2 = scmp.lt.s32.totalorder %s2847_s11, %s2847_s11 }
  0x1f   : > { %p2578_p9 = scmp.ne.s32.totalorder %s2847_s11, %s2577_s10  ;;  %p2586_p6 = scmp.lt.s32.totalorder %s2577_s10, %s2577_s10 }
  0x21   : > { %p2580_p10 = pnand %p2578_p9, %p2870_p13  ;;  %p2587_p12 = por %p2586_p6, %p2585_p2 }
  0x23   : > { %p2581_p1 = pneg %p2580_p10 }
  0x25   : > { %p2588_p0 = pnand %p2587_p12, %p2581_p1 }
  0x27   : > { %2591 = shalt.err (!%p2588_p0)
}
  0x28   : > { %s2757_s13 = smov 512   ;;  %s2758_s15 = smov 32  }
  0x29   : > { %2502 = dma.hbm_to_vmem [thread:$0]  (!%p2854_p11), %s3105_s1, 32768, %s2847_s11, [#allocation6], %s2757_s13, %s2757_s13, %s2758_s15  }
  0x2a   : > { %s2592_s21 = scalar_lea.hbm %s3107_s3, 32768 }
  0x2b   : > { %p2593_p2 = scmp.ne.s32.totalorder %s3107_s3, %s2592_s21  ;;  %p2599_p10 = scmp.lt.u32.totalorder %s2592_s21, %s3107_s3 }
  0x2d   : > { %p2595_p1 = pnand %p2593_p2, %p2870_p13 }
  0x2f   : > { %p2596_p6 = pneg %p2595_p1 }
  0x31   : > { %p2601_p3 = pnand %p2599_p10, %p2596_p6 }
  0x33   : > { %2604 = shalt.err (!%p2601_p3)
}
  0x34   : > { %s2605_s11 = scalar_lea.vmem %s2858_s14, 32768  ;;  %p2613_p12 = scmp.lt.s32.totalorder %s2858_s14, %s2858_s14 }
  0x35   : > { %p2606_p5 = scmp.ne.s32.totalorder %s2858_s14, %s2605_s11  ;;  %p2614_p0 = scmp.lt.s32.totalorder %s2605_s11, %s2605_s11 }
  0x37   : > { %p2608_p7 = pnand %p2606_p5, %p2870_p13  ;;  %p2615_p2 = por %p2614_p0, %p2613_p12 }
  0x39   : > { %p2609_p9 = pneg %p2608_p7 }
  0x3b   : > { %p2616_p1 = pnand %p2615_p2, %p2609_p9 }
  0x3d   : > { %2619 = shalt.err (!%p2616_p1)
}
  0x3e   : > { %2505 = dma.hbm_to_vmem [thread:$0]  (!%p2854_p11), %s3107_s3, 32768, %s2858_s14, [#allocation6], %s2757_s13, %s2757_s13, %s2758_s15  }
  0x3f   : > { %s2620_s20 = scalar_lea.hbm %s3109_s5, 8192 }
  0x40   : > { %p2621_p6 = scmp.ne.s32.totalorder %s3109_s5, %s2620_s20  ;;  %p2627_p5 = scmp.lt.u32.totalorder %s2620_s20, %s3109_s5 }
  0x42   : > { %p2623_p10 = pnand %p2621_p6, %p2870_p13 }
  0x44   : > { %p2624_p3 = pneg %p2623_p10 }
  0x46   : > { %p2629_p7 = pnand %p2627_p5, %p2624_p3 }
  0x48   : > { %2632 = shalt.err (!%p2629_p7)
}
  0x49   : > { %s2633_s11 = scalar_lea.vmem %s253_s16, 8192  ;;  %p2641_p2 = scmp.lt.s32.totalorder %s253_s16, %s253_s16 }
  0x4a   : > { %p2634_p9 = scmp.ne.s32.totalorder %s253_s16, %s2633_s11  ;;  %p2642_p1 = scmp.lt.s32.totalorder %s2633_s11, %s2633_s11 }
  0x4c   : > { %p2636_p12 = pnand %p2634_p9, %p2870_p13  ;;  %p2643_p4 = por %p2642_p1, %p2641_p2 }
  0x4e   : > { %p2637_p0 = pneg %p2636_p12 }
  0x50   : > { %p2644_p8 = pnand %p2643_p4, %p2637_p0 }
  0x52   : > { %2647 = shalt.err (!%p2644_p8)
}
  0x53   : > { %s2759_s14 = smov 128   ;;  %s2760_s22 = smov 8  }
  0x54   : > { %2508 = dma.hbm_to_vmem [thread:$0]  (!%p2854_p11), %s3109_s5, 8192, %s253_s16, [#allocation9], %s2759_s14, %s2759_s14, %s2760_s22  }
  0x55   : > { %s2934_s8 = sadd.s32 1, %s2752_s27   ;;  %s32_s18 = sadd.s32 1, %s2748_s26 }
  0x56   : > { %s29_s17 = ssub.s32 %s2752_s27, %s2934_s8  ;;  %p39_p8 = scmp.ne.s32.totalorder %s2748_s26, %s2744_s25 }
  0x57   : > { %p30_p4 = scmp.eq.s32.totalorder %s29_s17, 0  ;;  %p40_p13 = scmp.eq.s32.totalorder %s2752_s27, 0 }
  0x58   : > { %p2520_p6 = scmp.lt.s32.totalorder %s2752_s27, 2  ;;  %p3122_p3 = scmp.eq.s32.totalorder %s2824_s28, 1 }
  0x59   : > { %s2944_s19 = scalar_select %p30_p4, %s2748_s26, %s32_s18  }
  0x5a   : > { %p41_p10 = por %p40_p13, %p39_p8  ;;  %p2948_p5 = por %p3122_p3, %p39_p8 }
  0x5b   : > { %s269_s12 = sand.u32 1, %s2748_s26   ;;  %s1820_s21 = sshll.u32 %s2752_s27, 9 }
  0x5c   : > { %s1806_s16 = sshll.u32 %s269_s12, 5  ;;  %s2957_s10 = scalar_lea.hbm %s3104_s0, %s1820_s21 }
  0x5d   : > { %s273_s11 = scalar_lea.vmem [#allocation2], %s1806_s16  ;;  %p2959_p11 = pnand %p2520_p6, %p41_p10 }
  0x5e   : > { %s281_s14 = sshll.u32 %s273_s11, 4  ;;  %s270_s13 = scalar_lea.sflag [#allocation3], %s269_s12  ;;  %s2963_s14 = int_to_ptr.vmem [resolvable:$true] %s281_s14 }
  0x5f   : > { %s2648_s15 = scalar_lea.hbm %s2957_s10, 512  ;;  %p2650_p9 = pneg %p2959_p11 }
  0x60   : > { %p2649_p7 = scmp.ne.s32.totalorder %s2957_s10, %s2648_s15  ;;  %s2653_s21 = scalar_lea.hbm %s3104_s0, 1024 }
  0x61   : > { %p2654_p2 = scmp.lt.u32.totalorder %s2957_s10, %s3104_s0  ;;  %p2655_p1 = scmp.lt.u32.totalorder %s2653_s21, %s2648_s15 }
  0x62   : > { %p2651_p12 = pnand %p2650_p9, %p2649_p7  ;;  %p2657_p8 = scmp.lt.u32.totalorder %s2648_s15, %s2957_s10 }
  0x63   : > { %p2656_p4 = por %p2655_p1, %p2654_p2 }
  0x64   : > { %p2652_p0 = pneg %p2651_p12 }
  0x65   : > { %p2658_p13 = por %p2657_p8, %p2656_p4 }
  0x67   : > { %p2659_p6 = pnand %p2658_p13, %p2652_p0 }
  0x69   : > { %2662 = shalt.err (!%p2659_p6)
}
  0x6a   : > { %s2663_s12 = scalar_lea.vmem %s2963_s14, 512  ;;  %s2761_s29 = smov [#allocation2]  }
  0x6b   : > { %p2664_p10 = scmp.ne.s32.totalorder %s2963_s14, %s2663_s12  ;;  %s2668_s11 = sshll.u32 %s2761_s29, 4  ;;  %s2669_s11 = int_to_ptr.vmem [resolvable:$false] %s2668_s11 }
  0x6c   : > { %s2670_s17 = scalar_lea.vmem %s2669_s11, 1024  ;;  %p2671_p12 = scmp.lt.s32.totalorder %s2963_s14, %s2669_s11 }
  0x6d   : > { %p2666_p3 = pnand %p2664_p10, %p2650_p9  ;;  %p2672_p2 = scmp.lt.s32.totalorder %s2670_s17, %s2663_s12 }
  0x6f   : > { %p2667_p7 = pneg %p2666_p3  ;;  %p2673_p1 = por %p2672_p2, %p2671_p12 }
  0x71   : > { %p2674_p4 = pnand %p2673_p1, %p2667_p7 }
  0x73   : > { %2677 = shalt.err (!%p2674_p4)
}
  0x74   : > { %2512 = dma.hbm_to_vmem [thread:$0]  (!%p2959_p11), %s2957_s10, 512, %s2963_s14, %s270_s13  }
  0x75   : > { %p3125_p0 = scmp.ne.s32.totalorder %s3119_s9, 0 }
  0x76   : > { %s2993_s15 = sand.u32 (!%p3125_p0), 1, %s2744_s25   ;;  %p3126_p9 = scmp.ne.s32.totalorder (!%p3125_p0), %s3116_s30, 0 }
  0x77   : > { %290 = sbr.rel (%p3125_p0) target bundleno = 999 (0x3e7), region = 48  ;;  %s1810_s18 = sshll.u32 (!%p3125_p0), %s2993_s15, 5 }
  0x78   : > { %s293_s21 = scalar_lea.sflag (!%p3125_p0), [#allocation3], %s2993_s15  ;;  %s2997_s16 = scalar_lea.vmem (!%p3125_p0), [#allocation2], %s1810_s18 }
  0x7e   : > { %2723 = dma.done.wait (%p3126_p9), %s293_s21, 512  }
  0x7f   : > { %2725 = vsyncadd (%p3126_p9), %s293_s21, 4294966784  ;;  %p3127_p11 = scmp.eq.s32.totalorder %s2824_s28, 0 }
  0x81   : > { %2727 = dma.done.wait (%p3127_p11), [#allocation6], 65536   ;;  %p3128_p8 = pmov %p3127_p11 }
  0x83   : > { %2729 = vsyncadd (%p3128_p8), [#allocation6], 4294901760  ;;  %p3129_p13 = pmov %p3128_p8 }
  0x84   : > { %p3130_p6 = pmov %p3128_p8 }
  0x85   : > { %2731 = dma.done.wait (%p3129_p13), [#allocation9], 8192  }
  0x86   : > { %2733 = vsyncadd (%p3130_p6), [#allocation9], 4294959104  ;;  %v344_v0 = vld [vmem:[#allocation5 + $0x8] sm:$0xff]  ;;  %v346_v2 = vld [vmem:[#allocation5 + $0x18] sm:$0xff]  ;;  %s1814_s22 = sshll.u32 %s2993_s15, 3  ;;  %s1817_s12 = sshll.u32 %s2824_s28, 7 }
  0x87   : > { %v348_v1 = vld [vmem:[#allocation5 + $0x28] sm:$0xff]  ;;  %v350_v4 = vld [vmem:[#allocation5 + $0x38] sm:$0xff]  ;;  %v343_v5 = vld [vmem:[#allocation5] sm:$0xff]  ;;  %s338_s29 = scalar_lea.vmem [#allocation10], %s1814_s22  ;;  %s3060_s21 = scalar_lea.hbm %s3111_s7, %s1817_s12 }
  0x88   : > { %v1891_v3 = vpack.c.bf16 %v348_v1, %v344_v0  ;;  %v347_v6 = vld [vmem:[#allocation5 + $0x20] sm:$0xff]  ;;  %v2019_v7 = vpack.c.bf16 %v350_v4, %v346_v2  ;;  %v345_v9 = vld [vmem:[#allocation5 + $0x10] sm:$0xff]  ;;  %v352_v11 = vld [vmem:[#allocation5 + $0x48] sm:$0xff]  ;;  %s1701_s11 = sshll.u32 %s338_s29, 4  ;;  %s2762_s28 = smov [#allocation10]   ;;  %s3062_s11 = int_to_ptr.vmem [resolvable:$true] %s1701_s11 }
  0x89   : > { %v1893_v8 = vpack.c.bf16 %v347_v6, %v343_v5  ;;  %v349_v10 = vld [vmem:[#allocation5 + $0x30] sm:$0xff]  ;;  %v356_v13 = vld [vmem:[#allocation5 + $0x68] sm:$0xff]  ;;  %v354_v14 = vld [vmem:[#allocation5 + $0x58] sm:$0xff]  ;;  %s2678_s30 = scalar_lea.vmem %s3062_s11, 128  ;;  %s2682_s9 = sshll.u32 %s2762_s28, 4  ;;  %s2683_s9 = int_to_ptr.vmem [resolvable:$false] %s2682_s9 }
  0x8a   : > { %1892 = vmatprep.subr.bf16.mxu0 %v1891_v3  ;;  %v2021_v12 = vpack.c.bf16 %v349_v10, %v345_v9  ;;  %v358_v15 = vld [vmem:[#allocation5 + $0x78] sm:$0xff]  ;;  %2020 = vmatprep.subr.bf16.mxu1 %v2019_v7  ;;  %v1895_v16 = vpack.c.bf16 %v356_v13, %v352_v11  ;;  %v351_v18 = vld [vmem:[#allocation5 + $0x40] sm:$0xff]  ;;  %v353_v20 = vld [vmem:[#allocation5 + $0x50] sm:$0xff]  ;;  %p2679_p10 = scmp.ne.s32.totalorder %s3062_s11, %s2678_s30  ;;  %s2684_s10 = scalar_lea.vmem %s2683_s9, 256 }
  0x8b   : > { %1894 = vmatpush1.bf16.msra.mxu0 %v1893_v8  ;;  %v2023_v17 = vpack.c.bf16 %v358_v15, %v354_v14  ;;  %v355_v19 = vld [vmem:[#allocation5 + $0x60] sm:$0xff]  ;;  %v357_v22 = vld [vmem:[#allocation5 + $0x70] sm:$0xff]  ;;  %v360_v23 = vld [vmem:[#allocation5 + $0x88] sm:$0xff]  ;;  %p2685_p12 = scmp.lt.s32.totalorder %s3062_s11, %s2683_s9  ;;  %p2686_p2 = scmp.lt.s32.totalorder %s2684_s10, %s2678_s30 }
  0x8c   : > { %2022 = vmatpush1.bf16.msra.mxu1 %v2021_v12  ;;  %v1897_v21 = vpack.c.bf16 %v355_v19, %v351_v18  ;;  %v364_v24 = vld [vmem:[#allocation5 + $0xa8] sm:$0xff]  ;;  %1896 = vmatprep.subr.bf16.mxu0 %v1895_v16  ;;  %v2025_v25 = vpack.c.bf16 %v357_v22, %v353_v20  ;;  %v362_v27 = vld [vmem:[#allocation5 + $0x98] sm:$0xff]  ;;  %v359_v29 = vld [vmem:[#allocation5 + $0x80] sm:$0xff]  ;;  %p2680_p3 = pnand %p2679_p10, %p2948_p5 }
  0x8d   : > { %2024 = vmatprep.subr.bf16.mxu1 %v2023_v17  ;;  %v1899_v26 = vpack.c.bf16 %v364_v24, %v360_v23  ;;  %v366_v28 = vld [vmem:[#allocation5 + $0xb8] sm:$0xff]  ;;  %v363_v31 = vld [vmem:[#allocation5 + $0xa0] sm:$0xff]  ;;  %v361_v32 = vld [vmem:[#allocation5 + $0x90] sm:$0xff]  ;;  %p2687_p1 = por %p2686_p2, %p2685_p12 }
  0x8e   : > { %v2027_v30 = vpack.c.bf16 %v366_v28, %v362_v27  ;;  %v365_v33 = vld [vmem:[#allocation5 + $0xb0] sm:$0xff]  ;;  %v1901_v34 = vpack.c.bf16 %v363_v31, %v359_v29  ;;  %v368_v35 = vld [vmem:[#allocation5 + $0xc8] sm:$0xff]  ;;  %v370_v37 = vld [vmem:[#allocation5 + $0xd8] sm:$0xff]  ;;  %p2681_p7 = pneg %p2680_p3 }
  0x8f   : > { %1898 = vmatpush1.bf16.msra.mxu0 %v1897_v21  ;;  %v372_v36 = vld [vmem:[#allocation5 + $0xe8] sm:$0xff]  ;;  %v2029_v38 = vpack.c.bf16 %v365_v33, %v361_v32  ;;  %v374_v40 = vld [vmem:[#allocation5 + $0xf8] sm:$0xff]  ;;  %v367_v41 = vld [vmem:[#allocation5 + $0xc0] sm:$0xff] }
  0x90   : > { %2026 = vmatpush1.bf16.msra.mxu1 %v2025_v25  ;;  %1900 = vmatprep.subr.bf16.mxu0 %v1899_v26  ;;  %v1903_v39 = vpack.c.bf16 %v372_v36, %v368_v35  ;;  %v371_v42 = vld [vmem:[#allocation5 + $0xe0] sm:$0xff]  ;;  %v2031_v43 = vpack.c.bf16 %v374_v40, %v370_v37  ;;  %v369_v44 = vld [vmem:[#allocation5 + $0xd0] sm:$0xff]  ;;  %v376_v46 = vld [vmem:[#allocation5 + $0x108] sm:$0xff]  ;;  %p2688_p4 = pnand %p2687_p1, %p2681_p7 }
  0x91   : > { %2028 = vmatprep.subr.bf16.mxu1 %v2027_v30  ;;  %v373_v45 = vld [vmem:[#allocation5 + $0xf0] sm:$0xff]  ;;  %v380_v47 = vld [vmem:[#allocation5 + $0x128] sm:$0xff]  ;;  %v378_v48 = vld [vmem:[#allocation5 + $0x118] sm:$0xff]  ;;  %v1905_v50 = vpack.c.bf16 %v371_v42, %v367_v41 }
  0x92   : > { %v382_v49 = vld [vmem:[#allocation5 + $0x138] sm:$0xff]  ;;  %v2033_v51 = vpack.c.bf16 %v373_v45, %v369_v44  ;;  %v1907_v52 = vpack.c.bf16 %v380_v47, %v376_v46  ;;  %v375_v53 = vld [vmem:[#allocation5 + $0x100] sm:$0xff]  ;;  %v377_v55 = vld [vmem:[#allocation5 + $0x110] sm:$0xff] }
  0x93   : > { %1902 = vmatpush1.bf16.msra.mxu0 %v1901_v34  ;;  %v379_v54 = vld [vmem:[#allocation5 + $0x120] sm:$0xff]  ;;  %v2035_v56 = vpack.c.bf16 %v382_v49, %v378_v48  ;;  %v381_v57 = vld [vmem:[#allocation5 + $0x130] sm:$0xff]  ;;  %v384_v58 = vld [vmem:[#allocation5 + $0x148] sm:$0xff] }
  0x94   : > { %2030 = vmatpush1.bf16.msra.mxu1 %v2029_v38  ;;  %1904 = vmatprep.subr.bf16.mxu0 %v1903_v39  ;;  %v388_v59 = vld [vmem:[#allocation5 + $0x168] sm:$0xff]  ;;  %v386_v60 = vld [vmem:[#allocation5 + $0x158] sm:$0xff]  ;;  %v1909_v62 = vpack.c.bf16 %v379_v54, %v375_v53  ;;  %v2037_v63 = vpack.c.bf16 %v381_v57, %v377_v55  ;;  %v383_v1 = vld [vmem:[#allocation5 + $0x140] sm:$0xff] }
  0x95   : > { %2032 = vmatprep.subr.bf16.mxu1 %v2031_v43  ;;  %v390_v61 = vld [vmem:[#allocation5 + $0x178] sm:$0xff]  ;;  %v1911_v0 = vpack.c.bf16 %v388_v59, %v384_v58  ;;  %v387_v2 = vld [vmem:[#allocation5 + $0x160] sm:$0xff]  ;;  %v385_v3 = vld [vmem:[#allocation5 + $0x150] sm:$0xff] }
  0x96   : > { %v2039_v4 = vpack.c.bf16 %v390_v61, %v386_v60  ;;  %v389_v5 = vld [vmem:[#allocation5 + $0x170] sm:$0xff]  ;;  %v392_v6 = vld [vmem:[#allocation5 + $0x188] sm:$0xff]  ;;  %v394_v8 = vld [vmem:[#allocation5 + $0x198] sm:$0xff]  ;;  %v1913_v10 = vpack.c.bf16 %v387_v2, %v383_v1 }
  0x97   : > { %1906 = vmatpush1.bf16.msra.mxu0 %v1905_v50  ;;  %v396_v7 = vld [vmem:[#allocation5 + $0x1a8] sm:$0xff]  ;;  %v398_v9 = vld [vmem:[#allocation5 + $0x1b8] sm:$0xff]  ;;  %v2041_v11 = vpack.c.bf16 %v389_v5, %v385_v3  ;;  %v391_v13 = vld [vmem:[#allocation5 + $0x180] sm:$0xff] }
  0x98   : > { %2034 = vmatpush1.bf16.msra.mxu1 %v2033_v51  ;;  %1908 = vmatprep.subr.bf16.mxu0 %v1907_v52  ;;  %v1915_v12 = vpack.c.bf16 %v396_v7, %v392_v6  ;;  %v395_v14 = vld [vmem:[#allocation5 + $0x1a0] sm:$0xff]  ;;  %v393_v15 = vld [vmem:[#allocation5 + $0x190] sm:$0xff]  ;;  %v2043_v16 = vpack.c.bf16 %v398_v9, %v394_v8  ;;  %v400_v18 = vld [vmem:[#allocation5 + $0x1c8] sm:$0xff] }
  0x99   : > { %2036 = vmatprep.subr.bf16.mxu1 %v2035_v56  ;;  %v397_v17 = vld [vmem:[#allocation5 + $0x1b0] sm:$0xff]  ;;  %v404_v19 = vld [vmem:[#allocation5 + $0x1e8] sm:$0xff]  ;;  %v402_v20 = vld [vmem:[#allocation5 + $0x1d8] sm:$0xff]  ;;  %v1917_v22 = vpack.c.bf16 %v395_v14, %v391_v13 }
  0x9a   : > { %v406_v21 = vld [vmem:[#allocation5 + $0x1f8] sm:$0xff]  ;;  %v2045_v23 = vpack.c.bf16 %v397_v17, %v393_v15  ;;  %v1919_v24 = vpack.c.bf16 %v404_v19, %v400_v18  ;;  %v399_v25 = vld [vmem:[#allocation5 + $0x1c0] sm:$0xff]  ;;  %v401_v27 = vld [vmem:[#allocation5 + $0x1d0] sm:$0xff] }
  0x9b   : > { %1910 = vmatpush1.bf16.msra.mxu0 %v1909_v62  ;;  %v403_v26 = vld [vmem:[#allocation5 + $0x1e0] sm:$0xff]  ;;  %v2047_v28 = vpack.c.bf16 %v406_v21, %v402_v20  ;;  %v405_v29 = vld [vmem:[#allocation5 + $0x1f0] sm:$0xff]  ;;  %v408_v30 = vld [vmem:[#allocation5 + $0x208] sm:$0xff] }
  0x9c   : > { %2038 = vmatpush1.bf16.msra.mxu1 %v2037_v63  ;;  %1912 = vmatprep.subr.bf16.mxu0 %v1911_v0  ;;  %v412_v31 = vld [vmem:[#allocation5 + $0x228] sm:$0xff]  ;;  %v410_v32 = vld [vmem:[#allocation5 + $0x218] sm:$0xff]  ;;  %v1921_v34 = vpack.c.bf16 %v403_v26, %v399_v25  ;;  %v2049_v35 = vpack.c.bf16 %v405_v29, %v401_v27  ;;  %v407_v37 = vld [vmem:[#allocation5 + $0x200] sm:$0xff] }
  0x9d   : > { %2040 = vmatprep.subr.bf16.mxu1 %v2039_v4  ;;  %v414_v33 = vld [vmem:[#allocation5 + $0x238] sm:$0xff]  ;;  %v1923_v36 = vpack.c.bf16 %v412_v31, %v408_v30  ;;  %v411_v38 = vld [vmem:[#allocation5 + $0x220] sm:$0xff]  ;;  %v409_v39 = vld [vmem:[#allocation5 + $0x210] sm:$0xff] }
  0x9e   : > { %v2051_v40 = vpack.c.bf16 %v414_v33, %v410_v32  ;;  %v413_v41 = vld [vmem:[#allocation5 + $0x230] sm:$0xff]  ;;  %v416_v42 = vld [vmem:[#allocation5 + $0x248] sm:$0xff]  ;;  %v418_v44 = vld [vmem:[#allocation5 + $0x258] sm:$0xff]  ;;  %v1925_v46 = vpack.c.bf16 %v411_v38, %v407_v37 }
  0x9f   : > { %1914 = vmatpush1.bf16.msra.mxu0 %v1913_v10  ;;  %v420_v43 = vld [vmem:[#allocation5 + $0x268] sm:$0xff]  ;;  %v422_v45 = vld [vmem:[#allocation5 + $0x278] sm:$0xff]  ;;  %v2053_v47 = vpack.c.bf16 %v413_v41, %v409_v39  ;;  %v415_v49 = vld [vmem:[#allocation5 + $0x240] sm:$0xff] }
  0xa0   : > { %2042 = vmatpush1.bf16.msra.mxu1 %v2041_v11  ;;  %1916 = vmatprep.subr.bf16.mxu0 %v1915_v12  ;;  %v1927_v48 = vpack.c.bf16 %v420_v43, %v416_v42  ;;  %v419_v50 = vld [vmem:[#allocation5 + $0x260] sm:$0xff]  ;;  %v417_v51 = vld [vmem:[#allocation5 + $0x250] sm:$0xff]  ;;  %v2055_v52 = vpack.c.bf16 %v422_v45, %v418_v44  ;;  %v424_v54 = vld [vmem:[#allocation5 + $0x288] sm:$0xff] }
  0xa1   : > { %2044 = vmatprep.subr.bf16.mxu1 %v2043_v16  ;;  %v421_v53 = vld [vmem:[#allocation5 + $0x270] sm:$0xff]  ;;  %v428_v55 = vld [vmem:[#allocation5 + $0x2a8] sm:$0xff]  ;;  %v426_v56 = vld [vmem:[#allocation5 + $0x298] sm:$0xff]  ;;  %v1929_v58 = vpack.c.bf16 %v419_v50, %v415_v49 }
  0xa2   : > { %v430_v57 = vld [vmem:[#allocation5 + $0x2b8] sm:$0xff]  ;;  %v2057_v59 = vpack.c.bf16 %v421_v53, %v417_v51  ;;  %v1931_v60 = vpack.c.bf16 %v428_v55, %v424_v54  ;;  %v423_v61 = vld [vmem:[#allocation5 + $0x280] sm:$0xff]  ;;  %v425_v63 = vld [vmem:[#allocation5 + $0x290] sm:$0xff] }
  0xa3   : > { %1918 = vmatpush1.bf16.msra.mxu0 %v1917_v22  ;;  %v427_v62 = vld [vmem:[#allocation5 + $0x2a0] sm:$0xff]  ;;  %v2059_v0 = vpack.c.bf16 %v430_v57, %v426_v56  ;;  %v429_v1 = vld [vmem:[#allocation5 + $0x2b0] sm:$0xff]  ;;  %v432_v2 = vld [vmem:[#allocation5 + $0x2c8] sm:$0xff] }
  0xa4   : > { %2046 = vmatpush1.bf16.msra.mxu1 %v2045_v23  ;;  %1920 = vmatprep.subr.bf16.mxu0 %v1919_v24  ;;  %v436_v3 = vld [vmem:[#allocation5 + $0x2e8] sm:$0xff]  ;;  %v434_v4 = vld [vmem:[#allocation5 + $0x2d8] sm:$0xff]  ;;  %v1933_v6 = vpack.c.bf16 %v427_v62, %v423_v61  ;;  %v431_v7 = vld [vmem:[#allocation5 + $0x2c0] sm:$0xff]  ;;  %v2061_v8 = vpack.c.bf16 %v429_v1, %v425_v63 }
  0xa5   : > { %2048 = vmatprep.subr.bf16.mxu1 %v2047_v28  ;;  %v438_v5 = vld [vmem:[#allocation5 + $0x2f8] sm:$0xff]  ;;  %v1935_v9 = vpack.c.bf16 %v436_v3, %v432_v2  ;;  %v435_v10 = vld [vmem:[#allocation5 + $0x2e0] sm:$0xff]  ;;  %v433_v11 = vld [vmem:[#allocation5 + $0x2d0] sm:$0xff] }
  0xa6   : > { %v437_v12 = vld [vmem:[#allocation5 + $0x2f0] sm:$0xff]  ;;  %v2063_v13 = vpack.c.bf16 %v438_v5, %v434_v4  ;;  %v440_v14 = vld [vmem:[#allocation5 + $0x308] sm:$0xff]  ;;  %v442_v17 = vld [vmem:[#allocation5 + $0x318] sm:$0xff]  ;;  %v1937_v19 = vpack.c.bf16 %v435_v10, %v431_v7 }
  0xa7   : > { %1922 = vmatpush1.bf16.msra.mxu0 %v1921_v34  ;;  %v444_v15 = vld [vmem:[#allocation5 + $0x328] sm:$0xff]  ;;  %v446_v18 = vld [vmem:[#allocation5 + $0x338] sm:$0xff]  ;;  %v2065_v20 = vpack.c.bf16 %v437_v12, %v433_v11  ;;  %v439_v22 = vld [vmem:[#allocation5 + $0x300] sm:$0xff] }
  0xa8   : > { %2050 = vmatpush1.bf16.msra.mxu1 %v2049_v35  ;;  %1924 = vmatprep.subr.bf16.mxu0 %v1923_v36  ;;  %v340_v16 = vld [vmem:[%s2997_s16 + $0x8] sm:$0xff]  ;;  %v1939_v21 = vpack.c.bf16 %v444_v15, %v440_v14  ;;  %v443_v23 = vld [vmem:[#allocation5 + $0x320] sm:$0xff]  ;;  %v441_v24 = vld [vmem:[#allocation5 + $0x310] sm:$0xff]  ;;  %v2067_v25 = vpack.c.bf16 %v446_v18, %v442_v17 }
  0xa9   : > { %2052 = vmatprep.subr.bf16.mxu1 %v2051_v40  ;;  %685 = vmatprep.mubr.f32.mxu0 %v340_v16  ;;  %v445_v26 = vld [vmem:[#allocation5 + $0x330] sm:$0xff]  ;;  %v448_v27 = vld [vmem:[#allocation5 + $0x348] sm:$0xff]  ;;  %v450_v29 = vld [vmem:[#allocation5 + $0x358] sm:$0xff]  ;;  %v1941_v31 = vpack.c.bf16 %v443_v23, %v439_v22 }
  0xaa   : > { %827 = vmatprep.mubr.f32.mxu1 %v340_v16  ;;  %v452_v28 = vld [vmem:[#allocation5 + $0x368] sm:$0xff]  ;;  %v454_v30 = vld [vmem:[#allocation5 + $0x378] sm:$0xff]  ;;  %v2069_v32 = vpack.c.bf16 %v445_v26, %v441_v24  ;;  %v447_v34 = vld [vmem:[#allocation5 + $0x340] sm:$0xff] }
  0xab   : > { %1926 = vmatpush1.bf16.msra.mxu0 %v1925_v46  ;;  %v1943_v33 = vpack.c.bf16 %v452_v28, %v448_v27  ;;  %v451_v35 = vld [vmem:[#allocation5 + $0x360] sm:$0xff]  ;;  %v449_v36 = vld [vmem:[#allocation5 + $0x350] sm:$0xff]  ;;  %v2071_v37 = vpack.c.bf16 %v454_v30, %v450_v29  ;;  %v456_v39 = vld [vmem:[#allocation5 + $0x388] sm:$0xff] }
  0xac   : > { %2054 = vmatpush1.bf16.msra.mxu1 %v2053_v47  ;;  %1928 = vmatprep.subr.bf16.mxu0 %v1927_v48  ;;  %v453_v38 = vld [vmem:[#allocation5 + $0x370] sm:$0xff]  ;;  %v460_v40 = vld [vmem:[#allocation5 + $0x3a8] sm:$0xff]  ;;  %v458_v41 = vld [vmem:[#allocation5 + $0x398] sm:$0xff]  ;;  %v1945_v43 = vpack.c.bf16 %v451_v35, %v447_v34 }
  0xad   : > { %2056 = vmatprep.subr.bf16.mxu1 %v2055_v52  ;;  %v462_v42 = vld [vmem:[#allocation5 + $0x3b8] sm:$0xff]  ;;  %v2073_v44 = vpack.c.bf16 %v453_v38, %v449_v36  ;;  %v1947_v45 = vpack.c.bf16 %v460_v40, %v456_v39  ;;  %v455_v46 = vld [vmem:[#allocation5 + $0x380] sm:$0xff]  ;;  %v457_v48 = vld [vmem:[#allocation5 + $0x390] sm:$0xff] }
  0xae   : > { %v459_v47 = vld [vmem:[#allocation5 + $0x3a0] sm:$0xff]  ;;  %v2075_v49 = vpack.c.bf16 %v462_v42, %v458_v41  ;;  %v461_v50 = vld [vmem:[#allocation5 + $0x3b0] sm:$0xff]  ;;  %v464_v51 = vld [vmem:[#allocation5 + $0x3c8] sm:$0xff] }
  0xaf   : > { %1930 = vmatpush1.bf16.msra.mxu0 %v1929_v58  ;;  %v468_v52 = vld [vmem:[#allocation5 + $0x3e8] sm:$0xff]  ;;  %v466_v53 = vld [vmem:[#allocation5 + $0x3d8] sm:$0xff]  ;;  %v1949_v55 = vpack.c.bf16 %v459_v47, %v455_v46  ;;  %v2077_v56 = vpack.c.bf16 %v461_v50, %v457_v48  ;;  %v463_v58 = vld [vmem:[#allocation5 + $0x3c0] sm:$0xff] }
  0xb0   : > { %2058 = vmatpush1.bf16.msra.mxu1 %v2057_v59  ;;  %1932 = vmatprep.subr.bf16.mxu0 %v1931_v60  ;;  %v470_v54 = vld [vmem:[#allocation5 + $0x3f8] sm:$0xff]  ;;  %v1951_v57 = vpack.c.bf16 %v468_v52, %v464_v51  ;;  %v467_v59 = vld [vmem:[#allocation5 + $0x3e0] sm:$0xff]  ;;  %v465_v60 = vld [vmem:[#allocation5 + $0x3d0] sm:$0xff] }
  0xb1   : > { %2060 = vmatprep.subr.bf16.mxu1 %v2059_v0  ;;  %v2079_v61 = vpack.c.bf16 %v470_v54, %v466_v53  ;;  %v469_v62 = vld [vmem:[#allocation5 + $0x3f0] sm:$0xff]  ;;  %v472_v63 = vld [vmem:[#allocation5 + $0x408] sm:$0xff]  ;;  %v474_v1 = vld [vmem:[#allocation5 + $0x418] sm:$0xff]  ;;  %v1953_v3 = vpack.c.bf16 %v467_v59, %v463_v58 }
  0xb2   : > { %v476_v0 = vld [vmem:[#allocation5 + $0x428] sm:$0xff]  ;;  %v478_v2 = vld [vmem:[#allocation5 + $0x438] sm:$0xff]  ;;  %v2081_v4 = vpack.c.bf16 %v469_v62, %v465_v60  ;;  %v475_v7 = vld [vmem:[#allocation5 + $0x420] sm:$0xff] }
  0xb3   : > { %1934 = vmatpush1.bf16.msra.mxu0 %v1933_v6  ;;  %v1955_v5 = vpack.c.bf16 %v476_v0, %v472_v63  ;;  %v471_v6 = vld [vmem:[#allocation5 + $0x400] sm:$0xff]  ;;  %v477_v10 = vld [vmem:[#allocation5 + $0x430] sm:$0xff]  ;;  %v480_v11 = vld [vmem:[#allocation5 + $0x448] sm:$0xff] }
  0xb4   : > { %2062 = vmatpush1.bf16.msra.mxu1 %v2061_v8  ;;  %1936 = vmatprep.subr.bf16.mxu0 %v1935_v9  ;;  %v473_v8 = vld [vmem:[#allocation5 + $0x410] sm:$0xff]  ;;  %v2083_v9 = vpack.c.bf16 %v478_v2, %v474_v1  ;;  %v484_v12 = vld [vmem:[#allocation5 + $0x468] sm:$0xff]  ;;  %v486_v14 = vld [vmem:[#allocation5 + $0x478] sm:$0xff]  ;;  %v1957_v16 = vpack.c.bf16 %v475_v7, %v471_v6 }
  0xb5   : > { %2064 = vmatprep.subr.bf16.mxu1 %v2063_v13  ;;  %v482_v13 = vld [vmem:[#allocation5 + $0x458] sm:$0xff]  ;;  %v339_v15 = vld [vmem:[%s2997_s16] sm:$0xff]  ;;  %v2085_v17 = vpack.c.bf16 %v477_v10, %v473_v8  ;;  %v1959_v18 = vpack.c.bf16 %v484_v12, %v480_v11  ;;  %v485_v23 = vld [vmem:[#allocation5 + $0x470] sm:$0xff] }
  0xb6   : > { %v2087_v22 = vpack.c.bf16 %v486_v14, %v482_v13  ;;  %v488_v24 = vld [vmem:[#allocation5 + $0x488] sm:$0xff]  ;;  %v490_v26 = vld [vmem:[#allocation5 + $0x498] sm:$0xff]  ;;  %v493_v35 = vld [vmem:[#allocation5 + $0x4b0] sm:$0xff] }
  0xb7   : > { %1938 = vmatpush1.bf16.msra.mxu0 %v1937_v19  ;;  %v479_v19 = vld [vmem:[#allocation5 + $0x440] sm:$0xff]  ;;  %v494_v27 = vld [vmem:[#allocation5 + $0x4b8] sm:$0xff]  ;;  %v496_v36 = vld [vmem:[#allocation5 + $0x4c8] sm:$0xff] }
  0xb8   : > { %2066 = vmatpush1.bf16.msra.mxu1 %v2065_v20  ;;  %1940 = vmatprep.subr.bf16.mxu0 %v1939_v21  ;;  %v483_v20 = vld [vmem:[#allocation5 + $0x460] sm:$0xff]  ;;  %v481_v21 = vld [vmem:[#allocation5 + $0x450] sm:$0xff]  ;;  %v2091_v34 = vpack.c.bf16 %v494_v27, %v490_v26  ;;  %v498_v38 = vld [vmem:[#allocation5 + $0x4d8] sm:$0xff] }
  0xb9   : > { %2068 = vmatprep.subr.bf16.mxu1 %v2067_v25  ;;  %v492_v25 = vld [vmem:[#allocation5 + $0x4a8] sm:$0xff]  ;;  %v1961_v28 = vpack.c.bf16 %v483_v20, %v479_v19  ;;  %v2089_v29 = vpack.c.bf16 %v485_v23, %v481_v21  ;;  %v502_v39 = vld [vmem:[#allocation5 + $0x4f8] sm:$0xff]  ;;  %v501_v47 = vld [vmem:[#allocation5 + $0x4f0] sm:$0xff] }
  0xba   : > { %v1963_v30 = vpack.c.bf16 %v492_v25, %v488_v24  ;;  %v2095_v46 = vpack.c.bf16 %v502_v39, %v498_v38  ;;  %v504_v48 = vld [vmem:[#allocation5 + $0x508] sm:$0xff]  ;;  %v506_v50 = vld [vmem:[#allocation5 + $0x518] sm:$0xff]  ;;  %v509_v59 = vld [vmem:[#allocation5 + $0x530] sm:$0xff] }
  0xbb   : > { %1942 = vmatpush1.bf16.msra.mxu0 %v1941_v31  ;;  %v487_v31 = vld [vmem:[#allocation5 + $0x480] sm:$0xff]  ;;  %v510_v51 = vld [vmem:[#allocation5 + $0x538] sm:$0xff]  ;;  %v512_v60 = vld [vmem:[#allocation5 + $0x548] sm:$0xff] }
  0xbc   : > { %2070 = vmatpush1.bf16.msra.mxu1 %v2069_v32  ;;  %1944 = vmatprep.subr.bf16.mxu0 %v1943_v33  ;;  %v491_v32 = vld [vmem:[#allocation5 + $0x4a0] sm:$0xff]  ;;  %v489_v33 = vld [vmem:[#allocation5 + $0x490] sm:$0xff]  ;;  %v2099_v58 = vpack.c.bf16 %v510_v51, %v506_v50  ;;  %v514_v62 = vld [vmem:[#allocation5 + $0x558] sm:$0xff] }
  0xbd   : > { %2072 = vmatprep.subr.bf16.mxu1 %v2071_v37  ;;  %v500_v37 = vld [vmem:[#allocation5 + $0x4e8] sm:$0xff]  ;;  %v1965_v40 = vpack.c.bf16 %v491_v32, %v487_v31  ;;  %v2093_v41 = vpack.c.bf16 %v493_v35, %v489_v33  ;;  %v518_v63 = vld [vmem:[#allocation5 + $0x578] sm:$0xff]  ;;  %v517_v7 = vld [vmem:[#allocation5 + $0x570] sm:$0xff] }
  0xbe   : > { %v1967_v42 = vpack.c.bf16 %v500_v37, %v496_v36  ;;  %v2103_v6 = vpack.c.bf16 %v518_v63, %v514_v62  ;;  %v520_v8 = vld [vmem:[#allocation5 + $0x588] sm:$0xff]  ;;  %v522_v10 = vld [vmem:[#allocation5 + $0x598] sm:$0xff]  ;;  %v519_v13 = vld [vmem:[#allocation5 + $0x580] sm:$0xff] }
  0xbf   : > { %1946 = vmatpush1.bf16.msra.mxu0 %v1945_v43  ;;  %v495_v43 = vld [vmem:[#allocation5 + $0x4c0] sm:$0xff]  ;;  %v526_v11 = vld [vmem:[#allocation5 + $0x5b8] sm:$0xff]  ;;  %v528_v20 = vld [vmem:[#allocation5 + $0x5c8] sm:$0xff] }
  0xc0   : > { %2074 = vmatpush1.bf16.msra.mxu1 %v2073_v44  ;;  %1948 = vmatprep.subr.bf16.mxu0 %v1947_v45  ;;  %v499_v44 = vld [vmem:[#allocation5 + $0x4e0] sm:$0xff]  ;;  %v497_v45 = vld [vmem:[#allocation5 + $0x4d0] sm:$0xff]  ;;  %v2107_v19 = vpack.c.bf16 %v526_v11, %v522_v10  ;;  %v532_v21 = vld [vmem:[#allocation5 + $0x5e8] sm:$0xff] }
  0xc1   : > { %2076 = vmatprep.subr.bf16.mxu1 %v2075_v49  ;;  %v508_v49 = vld [vmem:[#allocation5 + $0x528] sm:$0xff]  ;;  %v1969_v52 = vpack.c.bf16 %v499_v44, %v495_v43  ;;  %v2097_v53 = vpack.c.bf16 %v501_v47, %v497_v45  ;;  %v530_v23 = vld [vmem:[#allocation5 + $0x5d8] sm:$0xff]  ;;  %v1983_v27 = vpack.c.bf16 %v532_v21, %v528_v20  ;;  %v533_v32 = vld [vmem:[#allocation5 + $0x5f0] sm:$0xff] }
  0xc2   : > { %v1971_v54 = vpack.c.bf16 %v508_v49, %v504_v48  ;;  %v534_v24 = vld [vmem:[#allocation5 + $0x5f8] sm:$0xff]  ;;  %v536_v33 = vld [vmem:[#allocation5 + $0x608] sm:$0xff]  ;;  %v541_v44 = vld [vmem:[#allocation5 + $0x630] sm:$0xff] }
  0xc3   : > { %1950 = vmatpush1.bf16.msra.mxu0 %v1949_v55  ;;  %v503_v55 = vld [vmem:[#allocation5 + $0x500] sm:$0xff]  ;;  %v2111_v31 = vpack.c.bf16 %v534_v24, %v530_v23  ;;  %v538_v35 = vld [vmem:[#allocation5 + $0x618] sm:$0xff]  ;;  %v544_v45 = vld [vmem:[#allocation5 + $0x648] sm:$0xff] }
  0xc4   : > { %2078 = vmatpush1.bf16.msra.mxu1 %v2077_v56  ;;  %1952 = vmatprep.subr.bf16.mxu0 %v1951_v57  ;;  %v507_v56 = vld [vmem:[#allocation5 + $0x520] sm:$0xff]  ;;  %v505_v57 = vld [vmem:[#allocation5 + $0x510] sm:$0xff]  ;;  %v542_v36 = vld [vmem:[#allocation5 + $0x638] sm:$0xff] }
  0xc5   : > { %2080 = vmatprep.subr.bf16.mxu1 %v2079_v61  ;;  %v516_v61 = vld [vmem:[#allocation5 + $0x568] sm:$0xff]  ;;  %v1973_v0 = vpack.c.bf16 %v507_v56, %v503_v55  ;;  %v2101_v1 = vpack.c.bf16 %v509_v59, %v505_v57  ;;  %v2115_v43 = vpack.c.bf16 %v542_v36, %v538_v35  ;;  %v546_v47 = vld [vmem:[#allocation5 + $0x658] sm:$0xff]  ;;  %v549_v56 = vld [vmem:[#allocation5 + $0x670] sm:$0xff] }
  0xc6   : > { %v1975_v2 = vpack.c.bf16 %v516_v61, %v512_v60  ;;  %v550_v48 = vld [vmem:[#allocation5 + $0x678] sm:$0xff]  ;;  %v552_v57 = vld [vmem:[#allocation5 + $0x688] sm:$0xff]  ;;  %v567_v24 = vld [vmem:[#allocation5 + $0x700] sm:$0xff] }
  0xc7   : > { %1954 = vmatpush1.bf16.msra.mxu0 %v1953_v3  ;;  %v511_v3 = vld [vmem:[#allocation5 + $0x540] sm:$0xff]  ;;  %v2119_v55 = vpack.c.bf16 %v550_v48, %v546_v47  ;;  %v554_v59 = vld [vmem:[#allocation5 + $0x698] sm:$0xff] }
  0xc8   : > { %2082 = vmatpush1.bf16.msra.mxu1 %v2081_v4  ;;  %1956 = vmatprep.subr.bf16.mxu0 %v1955_v5  ;;  %v515_v4 = vld [vmem:[#allocation5 + $0x560] sm:$0xff]  ;;  %v513_v5 = vld [vmem:[#allocation5 + $0x550] sm:$0xff]  ;;  %v558_v60 = vld [vmem:[#allocation5 + $0x6b8] sm:$0xff] }
  0xc9   : > { %2084 = vmatprep.subr.bf16.mxu1 %v2083_v9  ;;  %v524_v9 = vld [vmem:[#allocation5 + $0x5a8] sm:$0xff]  ;;  %v1977_v12 = vpack.c.bf16 %v515_v4, %v511_v3  ;;  %v2105_v14 = vpack.c.bf16 %v517_v7, %v513_v5  ;;  %v2123_v3 = vpack.c.bf16 %v558_v60, %v554_v59  ;;  %v557_v4 = vld [vmem:[#allocation5 + $0x6b0] sm:$0xff]  ;;  %v562_v7 = vld [vmem:[#allocation5 + $0x6d8] sm:$0xff] }
  0xca   : > { %686 = vmatmul.mubr.f32.vlgmr.msra.gmra.mrb[0].mxu0 %v339_v15  ;;  %v560_v5 = vld [vmem:[#allocation5 + $0x6c8] sm:$0xff]  ;;  %v574_v20 = vld [vmem:[#allocation5 + $0x738] sm:$0xff]  ;;  %v575_v36 = vld [vmem:[#allocation5 + $0x740] sm:$0xff] }
  0xcb   : > { %1958 = vmatpush1.bf16.msra.mxu0 %v1957_v16  ;;  %828 = vmatmul.mubr.f32.vlgmr.msra.gmra.mrb[0].mxu1 %v339_v15  ;;  %v1979_v15 = vpack.c.bf16 %v524_v9, %v520_v8  ;;  %v523_v16 = vld [vmem:[#allocation5 + $0x5a0] sm:$0xff]  ;;  %v566_v8 = vld [vmem:[#allocation5 + $0x6f8] sm:$0xff] }
  0xcc   : > { %2086 = vmatpush1.bf16.msra.mxu1 %v2085_v17  ;;  %1960 = vmatprep.subr.bf16.mxu0 %v1959_v18  ;;  %v521_v17 = vld [vmem:[#allocation5 + $0x590] sm:$0xff]  ;;  %v1981_v25 = vpack.c.bf16 %v523_v16, %v519_v13  ;;  %v563_v13 = vld [vmem:[#allocation5 + $0x6e0] sm:$0xff] }
  0xcd   : > { %2088 = vmatprep.subr.bf16.mxu1 %v2087_v22  ;;  %v525_v18 = vld [vmem:[#allocation5 + $0x5b0] sm:$0xff]  ;;  %v342_v22 = vld [vmem:[%s2997_s16 + $0x18] sm:$0xff]  ;;  %v583_v48 = vld [vmem:[#allocation5 + $0x780] sm:$0xff] }
  0xce   : > { %756 = vmatprep.mubr.f32.mxu0 %v342_v22  ;;  %898 = vmatprep.mubr.f32.mxu1 %v342_v22  ;;  %v2109_v26 = vpack.c.bf16 %v525_v18, %v521_v17  ;;  %v565_v16 = vld [vmem:[#allocation5 + $0x6f0] sm:$0xff]  ;;  %v568_v17 = vld [vmem:[#allocation5 + $0x708] sm:$0xff]  ;;  %v591_v60 = vld [vmem:[#allocation5 + $0x7c0] sm:$0xff] }
  0xcf   : > { %1962 = vmatpush1.bf16.msra.mxu0 %v1961_v28  ;;  %v527_v28 = vld [vmem:[#allocation5 + $0x5c0] sm:$0xff]  ;;  %v572_v18 = vld [vmem:[#allocation5 + $0x728] sm:$0xff] }
  0xd0   : > { %2090 = vmatpush1.bf16.msra.mxu1 %v2089_v29  ;;  %1964 = vmatprep.subr.bf16.mxu0 %v1963_v30  ;;  %v531_v29 = vld [vmem:[#allocation5 + $0x5e0] sm:$0xff]  ;;  %v529_v30 = vld [vmem:[#allocation5 + $0x5d0] sm:$0xff]  ;;  %v2003_v23 = vpack.c.bf16 %v572_v18, %v568_v17 }
  0xd1   : > { %2092 = vmatprep.subr.bf16.mxu1 %v2091_v34  ;;  %v540_v34 = vld [vmem:[#allocation5 + $0x628] sm:$0xff]  ;;  %v1985_v37 = vpack.c.bf16 %v531_v29, %v527_v28  ;;  %v2113_v38 = vpack.c.bf16 %v533_v32, %v529_v30  ;;  %v573_v28 = vld [vmem:[#allocation5 + $0x730] sm:$0xff]  ;;  %v582_v32 = vld [vmem:[#allocation5 + $0x778] sm:$0xff] }
  0xd2   : > { %v1987_v39 = vpack.c.bf16 %v540_v34, %v536_v33  ;;  %v576_v29 = vld [vmem:[#allocation5 + $0x748] sm:$0xff]  ;;  %v341_v17 = vld [vmem:[%s2997_s16 + $0x10] sm:$0xff]  ;;  %s1688_s16 = scalar_lea.sflag [#allocation4], %s2993_s15 }
  0xd3   : > { %1966 = vmatpush1.bf16.msra.mxu0 %v1965_v40  ;;  %v535_v40 = vld [vmem:[#allocation5 + $0x600] sm:$0xff]  ;;  %v580_v30 = vld [vmem:[#allocation5 + $0x768] sm:$0xff] }
  0xd4   : > { %2094 = vmatpush1.bf16.msra.mxu1 %v2093_v41  ;;  %1968 = vmatprep.subr.bf16.mxu0 %v1967_v42  ;;  %v539_v41 = vld [vmem:[#allocation5 + $0x620] sm:$0xff]  ;;  %v537_v42 = vld [vmem:[#allocation5 + $0x610] sm:$0xff]  ;;  %v2007_v35 = vpack.c.bf16 %v580_v30, %v576_v29  ;;  %v932_v29 = vld [vmem:[#allocation7 + $0xb8] sm:$0xff] }
  0xd5   : > { %2096 = vmatprep.subr.bf16.mxu1 %v2095_v46  ;;  %v548_v46 = vld [vmem:[#allocation5 + $0x668] sm:$0xff]  ;;  %v1989_v49 = vpack.c.bf16 %v539_v41, %v535_v40  ;;  %v2117_v50 = vpack.c.bf16 %v541_v44, %v537_v42  ;;  %v581_v40 = vld [vmem:[#allocation5 + $0x770] sm:$0xff]  ;;  %v590_v44 = vld [vmem:[#allocation5 + $0x7b8] sm:$0xff] }
  0xd6   : > { %v1991_v51 = vpack.c.bf16 %v548_v46, %v544_v45  ;;  %v584_v41 = vld [vmem:[#allocation5 + $0x788] sm:$0xff] }
  0xd7   : > { %1970 = vmatpush1.bf16.msra.mxu0 %v1969_v52  ;;  %v543_v52 = vld [vmem:[#allocation5 + $0x640] sm:$0xff]  ;;  %v588_v42 = vld [vmem:[#allocation5 + $0x7a8] sm:$0xff] }
  0xd8   : > { %2098 = vmatpush1.bf16.msra.mxu1 %v2097_v53  ;;  %1972 = vmatprep.subr.bf16.mxu0 %v1971_v54  ;;  %v547_v53 = vld [vmem:[#allocation5 + $0x660] sm:$0xff]  ;;  %v545_v54 = vld [vmem:[#allocation5 + $0x650] sm:$0xff]  ;;  %v2011_v47 = vpack.c.bf16 %v588_v42, %v584_v41  ;;  %v940_v41 = vld [vmem:[#allocation7 + $0xf8] sm:$0xff] }
  0xd9   : > { %2100 = vmatprep.subr.bf16.mxu1 %v2099_v58  ;;  %v556_v58 = vld [vmem:[#allocation5 + $0x6a8] sm:$0xff]  ;;  %v1993_v61 = vpack.c.bf16 %v547_v53, %v543_v52  ;;  %v2121_v62 = vpack.c.bf16 %v549_v56, %v545_v54  ;;  %v589_v52 = vld [vmem:[#allocation5 + $0x7b0] sm:$0xff]  ;;  %v598_v56 = vld [vmem:[#allocation5 + $0x7f8] sm:$0xff] }
  0xda   : > { %v1995_v63 = vpack.c.bf16 %v556_v58, %v552_v57  ;;  %v592_v53 = vld [vmem:[#allocation5 + $0x7c8] sm:$0xff] }
  0xdb   : > { %1974 = vmatpush1.bf16.msra.mxu0 %v1973_v0  ;;  %v551_v0 = vld [vmem:[#allocation5 + $0x680] sm:$0xff]  ;;  %v596_v54 = vld [vmem:[#allocation5 + $0x7e8] sm:$0xff] }
  0xdc   : > { %2102 = vmatpush1.bf16.msra.mxu1 %v2101_v1  ;;  %1976 = vmatprep.subr.bf16.mxu0 %v1975_v2  ;;  %v555_v1 = vld [vmem:[#allocation5 + $0x6a0] sm:$0xff]  ;;  %v553_v2 = vld [vmem:[#allocation5 + $0x690] sm:$0xff]  ;;  %v2015_v59 = vpack.c.bf16 %v596_v54, %v592_v53  ;;  %v948_v53 = vld [vmem:[#allocation7 + $0x138] sm:$0xff] }
  0xdd   : > { %2104 = vmatprep.subr.bf16.mxu1 %v2103_v6  ;;  %v564_v6 = vld [vmem:[#allocation5 + $0x6e8] sm:$0xff]  ;;  %v1997_v9 = vpack.c.bf16 %v555_v1, %v551_v0  ;;  %v2125_v10 = vpack.c.bf16 %v557_v4, %v553_v2  ;;  %v597_v0 = vld [vmem:[#allocation5 + $0x7f0] sm:$0xff]  ;;  %v916_v4 = vld [vmem:[#allocation7 + $0x38] sm:$0xff] }
  0xde   : > { %v1999_v11 = vpack.c.bf16 %v564_v6, %v560_v5  ;;  %v910_v1 = vld [vmem:[#allocation7 + $0x8] sm:$0xff] }
  0xdf   : > { %1978 = vmatpush1.bf16.msra.mxu0 %v1977_v12  ;;  %v559_v12 = vld [vmem:[#allocation5 + $0x6c0] sm:$0xff]  ;;  %v914_v2 = vld [vmem:[#allocation7 + $0x28] sm:$0xff] }
  0xe0   : > { %2106 = vmatpush1.bf16.msra.mxu1 %v2105_v14  ;;  %1980 = vmatprep.subr.bf16.mxu0 %v1979_v15  ;;  %v561_v14 = vld [vmem:[#allocation5 + $0x6d0] sm:$0xff]  ;;  %v2127_v15 = vpack.c.bf16 %v566_v8, %v562_v7  ;;  %v2001_v21 = vpack.c.bf16 %v563_v13, %v559_v12  ;;  %v2147_v7 = vpack.c.bf16 %v914_v2, %v910_v1  ;;  %v909_v8 = vld [vmem:[#allocation7] sm:$0xff]  ;;  %v918_v13 = vld [vmem:[#allocation7 + $0x48] sm:$0xff] }
  0xe1   : > { %2108 = vmatprep.subr.bf16.mxu1 %v2107_v19  ;;  %v570_v19 = vld [vmem:[#allocation5 + $0x718] sm:$0xff]  ;;  %v2129_v22 = vpack.c.bf16 %v565_v16, %v561_v14  ;;  %v915_v12 = vld [vmem:[#allocation7 + $0x30] sm:$0xff]  ;;  %v922_v14 = vld [vmem:[#allocation7 + $0x68] sm:$0xff] }
  0xe2   : > { %v924_v16 = vld [vmem:[#allocation7 + $0x78] sm:$0xff] }
  0xe3   : > { %1982 = vmatpush1.bf16.msra.mxu0 %v1981_v25  ;;  %v571_v25 = vld [vmem:[#allocation5 + $0x720] sm:$0xff]  ;;  %v956_v1 = vld [vmem:[#allocation7 + $0x178] sm:$0xff] }
  0xe4   : > { %2110 = vmatpush1.bf16.msra.mxu1 %v2109_v26  ;;  %1984 = vmatprep.subr.bf16.mxu0 %v1983_v27  ;;  %v569_v26 = vld [vmem:[#allocation5 + $0x710] sm:$0xff]  ;;  %v2131_v27 = vpack.c.bf16 %v574_v20, %v570_v19  ;;  %v2005_v33 = vpack.c.bf16 %v571_v25, %v567_v24  ;;  %v2151_v20 = vpack.c.bf16 %v922_v14, %v918_v13  ;;  %v964_v13 = vld [vmem:[#allocation7 + $0x1b8] sm:$0xff] }
  0xe5   : > { %2112 = vmatprep.subr.bf16.mxu1 %v2111_v31  ;;  %v578_v31 = vld [vmem:[#allocation5 + $0x758] sm:$0xff]  ;;  %v2133_v34 = vpack.c.bf16 %v573_v28, %v569_v26  ;;  %v923_v25 = vld [vmem:[#allocation7 + $0x70] sm:$0xff]  ;;  %v926_v26 = vld [vmem:[#allocation7 + $0x88] sm:$0xff] }
  0xe6   : > { %v928_v28 = vld [vmem:[#allocation7 + $0x98] sm:$0xff] }
  0xe7   : > { %1986 = vmatpush1.bf16.msra.mxu0 %v1985_v37  ;;  %v579_v37 = vld [vmem:[#allocation5 + $0x760] sm:$0xff] }
  0xe8   : > { %2114 = vmatpush1.bf16.msra.mxu1 %v2113_v38  ;;  %1988 = vmatprep.subr.bf16.mxu0 %v1987_v39  ;;  %v577_v38 = vld [vmem:[#allocation5 + $0x750] sm:$0xff]  ;;  %v2135_v39 = vpack.c.bf16 %v582_v32, %v578_v31  ;;  %v2009_v45 = vpack.c.bf16 %v579_v37, %v575_v36  ;;  %v2283_v36 = vpack.c.bf16 %v932_v29, %v928_v28  ;;  %v965_v29 = vld [vmem:[#allocation7 + $0x1c0] sm:$0xff] }
  0xe9   : > { %2116 = vmatprep.subr.bf16.mxu1 %v2115_v43  ;;  %v586_v43 = vld [vmem:[#allocation5 + $0x798] sm:$0xff]  ;;  %v2137_v46 = vpack.c.bf16 %v581_v40, %v577_v38  ;;  %v931_v37 = vld [vmem:[#allocation7 + $0xb0] sm:$0xff]  ;;  %v934_v38 = vld [vmem:[#allocation7 + $0xc8] sm:$0xff] }
  0xea   : > { %v936_v40 = vld [vmem:[#allocation7 + $0xd8] sm:$0xff] }
  0xeb   : > { %1990 = vmatpush1.bf16.msra.mxu0 %v1989_v49  ;;  %v587_v49 = vld [vmem:[#allocation5 + $0x7a0] sm:$0xff] }
  0xec   : > { %2118 = vmatpush1.bf16.msra.mxu1 %v2117_v50  ;;  %1992 = vmatprep.subr.bf16.mxu0 %v1991_v51  ;;  %v585_v50 = vld [vmem:[#allocation5 + $0x790] sm:$0xff]  ;;  %v2139_v51 = vpack.c.bf16 %v590_v44, %v586_v43  ;;  %v2013_v57 = vpack.c.bf16 %v587_v49, %v583_v48  ;;  %v2287_v48 = vpack.c.bf16 %v940_v41, %v936_v40  ;;  %v973_v41 = vld [vmem:[#allocation7 + $0x200] sm:$0xff] }
  0xed   : > { %2120 = vmatprep.subr.bf16.mxu1 %v2119_v55  ;;  %v594_v55 = vld [vmem:[#allocation5 + $0x7d8] sm:$0xff]  ;;  %v2141_v58 = vpack.c.bf16 %v589_v52, %v585_v50  ;;  %v939_v49 = vld [vmem:[#allocation7 + $0xf0] sm:$0xff]  ;;  %v942_v50 = vld [vmem:[#allocation7 + $0x108] sm:$0xff] }
  0xee   : > { %v944_v52 = vld [vmem:[#allocation7 + $0x118] sm:$0xff] }
  0xef   : > { %1994 = vmatpush1.bf16.msra.mxu0 %v1993_v61  ;;  %v595_v61 = vld [vmem:[#allocation5 + $0x7e0] sm:$0xff] }
  0xf0   : > { %2122 = vmatpush1.bf16.msra.mxu1 %v2121_v62  ;;  %1996 = vmatprep.subr.bf16.mxu0 %v1995_v63  ;;  %v593_v62 = vld [vmem:[#allocation5 + $0x7d0] sm:$0xff]  ;;  %v2143_v63 = vpack.c.bf16 %v598_v56, %v594_v55  ;;  %v2017_v5 = vpack.c.bf16 %v595_v61, %v591_v60  ;;  %v2291_v60 = vpack.c.bf16 %v948_v53, %v944_v52  ;;  %v981_v53 = vld [vmem:[#allocation7 + $0x240] sm:$0xff] }
  0xf1   : > { %2124 = vmatprep.subr.bf16.mxu1 %v2123_v3  ;;  %v912_v3 = vld [vmem:[#allocation7 + $0x18] sm:$0xff]  ;;  %v2145_v6 = vpack.c.bf16 %v597_v0, %v593_v62  ;;  %v947_v61 = vld [vmem:[#allocation7 + $0x130] sm:$0xff]  ;;  %v950_v62 = vld [vmem:[#allocation7 + $0x148] sm:$0xff] }
  0xf2   : > { %v952_v0 = vld [vmem:[#allocation7 + $0x158] sm:$0xff] }
  0xf3   : > { %1998 = vmatpush1.bf16.msra.mxu0 %v1997_v9  ;;  %v913_v9 = vld [vmem:[#allocation7 + $0x20] sm:$0xff] }
  0xf4   : > { %2126 = vmatpush1.bf16.msra.mxu1 %v2125_v10  ;;  %2000 = vmatprep.subr.bf16.mxu0 %v1999_v11  ;;  %v911_v10 = vld [vmem:[#allocation7 + $0x10] sm:$0xff]  ;;  %v2275_v11 = vpack.c.bf16 %v916_v4, %v912_v3  ;;  %v2149_v18 = vpack.c.bf16 %v913_v9, %v909_v8  ;;  %v2295_v8 = vpack.c.bf16 %v956_v1, %v952_v0  ;;  %v989_v1 = vld [vmem:[#allocation7 + $0x280] sm:$0xff] }
  0xf5   : > { %2128 = vmatprep.subr.bf16.mxu1 %v2127_v15  ;;  %v920_v15 = vld [vmem:[#allocation7 + $0x58] sm:$0xff]  ;;  %v2277_v19 = vpack.c.bf16 %v915_v12, %v911_v10  ;;  %v955_v9 = vld [vmem:[#allocation7 + $0x170] sm:$0xff]  ;;  %v958_v10 = vld [vmem:[#allocation7 + $0x188] sm:$0xff] }
  0xf6   : > { %v2279_v24 = vpack.c.bf16 %v924_v16, %v920_v15  ;;  %v960_v12 = vld [vmem:[#allocation7 + $0x198] sm:$0xff] }
  0xf7   : > { %2002 = vmatpush1.bf16.msra.mxu0 %v2001_v21  ;;  %v917_v21 = vld [vmem:[#allocation7 + $0x40] sm:$0xff] }
  0xf8   : > { %2130 = vmatpush1.bf16.msra.mxu1 %v2129_v22  ;;  %2004 = vmatprep.subr.bf16.mxu0 %v2003_v23  ;;  %v921_v22 = vld [vmem:[#allocation7 + $0x60] sm:$0xff]  ;;  %v919_v23 = vld [vmem:[#allocation7 + $0x50] sm:$0xff] }
  0xf9   : > { %2132 = vmatprep.subr.bf16.mxu1 %v2131_v27  ;;  %v930_v27 = vld [vmem:[#allocation7 + $0xa8] sm:$0xff]  ;;  %v2153_v30 = vpack.c.bf16 %v921_v22, %v917_v21  ;;  %v2281_v31 = vpack.c.bf16 %v923_v25, %v919_v23  ;;  %v963_v21 = vld [vmem:[#allocation7 + $0x1b0] sm:$0xff]  ;;  %v972_v25 = vld [vmem:[#allocation7 + $0x1f8] sm:$0xff] }
  0xfa   : > { %v2155_v32 = vpack.c.bf16 %v930_v27, %v926_v26  ;;  %v966_v22 = vld [vmem:[#allocation7 + $0x1c8] sm:$0xff] }
  0xfb   : > { %2006 = vmatpush1.bf16.msra.mxu0 %v2005_v33  ;;  %v925_v33 = vld [vmem:[#allocation7 + $0x80] sm:$0xff]  ;;  %v970_v23 = vld [vmem:[#allocation7 + $0x1e8] sm:$0xff] }
  0xfc   : > { %2134 = vmatpush1.bf16.msra.mxu1 %v2133_v34  ;;  %2008 = vmatprep.subr.bf16.mxu0 %v2007_v35  ;;  %v929_v34 = vld [vmem:[#allocation7 + $0xa0] sm:$0xff]  ;;  %v927_v35 = vld [vmem:[#allocation7 + $0x90] sm:$0xff]  ;;  %v2175_v28 = vpack.c.bf16 %v970_v23, %v966_v22 }
  0xfd   : > { %2136 = vmatprep.subr.bf16.mxu1 %v2135_v39  ;;  %v938_v39 = vld [vmem:[#allocation7 + $0xe8] sm:$0xff]  ;;  %v2157_v42 = vpack.c.bf16 %v929_v34, %v925_v33  ;;  %v2285_v43 = vpack.c.bf16 %v931_v37, %v927_v35  ;;  %v971_v33 = vld [vmem:[#allocation7 + $0x1f0] sm:$0xff]  ;;  %v980_v37 = vld [vmem:[#allocation7 + $0x238] sm:$0xff] }
  0xfe   : > { %v2159_v44 = vpack.c.bf16 %v938_v39, %v934_v38  ;;  %v974_v34 = vld [vmem:[#allocation7 + $0x208] sm:$0xff] }
  0xff   : > { %2010 = vmatpush1.bf16.msra.mxu0 %v2009_v45  ;;  %v933_v45 = vld [vmem:[#allocation7 + $0xc0] sm:$0xff]  ;;  %v978_v35 = vld [vmem:[#allocation7 + $0x228] sm:$0xff] }
 0x100   : > { %2138 = vmatpush1.bf16.msra.mxu1 %v2137_v46  ;;  %2012 = vmatprep.subr.bf16.mxu0 %v2011_v47  ;;  %v937_v46 = vld [vmem:[#allocation7 + $0xe0] sm:$0xff]  ;;  %v935_v47 = vld [vmem:[#allocation7 + $0xd0] sm:$0xff]  ;;  %v2179_v40 = vpack.c.bf16 %v978_v35, %v974_v34 }
 0x101   : > { %2140 = vmatprep.subr.bf16.mxu1 %v2139_v51  ;;  %v946_v51 = vld [vmem:[#allocation7 + $0x128] sm:$0xff]  ;;  %v2161_v54 = vpack.c.bf16 %v937_v46, %v933_v45  ;;  %v2289_v55 = vpack.c.bf16 %v939_v49, %v935_v47  ;;  %v979_v45 = vld [vmem:[#allocation7 + $0x230] sm:$0xff]  ;;  %v988_v49 = vld [vmem:[#allocation7 + $0x278] sm:$0xff] }
 0x102   : > { %v2163_v56 = vpack.c.bf16 %v946_v51, %v942_v50  ;;  %v982_v46 = vld [vmem:[#allocation7 + $0x248] sm:$0xff] }
 0x103   : > { %2014 = vmatpush1.bf16.msra.mxu0 %v2013_v57  ;;  %v941_v57 = vld [vmem:[#allocation7 + $0x100] sm:$0xff]  ;;  %v986_v47 = vld [vmem:[#allocation7 + $0x268] sm:$0xff] }
 0x104   : > { %2142 = vmatpush1.bf16.msra.mxu1 %v2141_v58  ;;  %2016 = vmatprep.subr.bf16.mxu0 %v2015_v59  ;;  %v945_v58 = vld [vmem:[#allocation7 + $0x120] sm:$0xff]  ;;  %v943_v59 = vld [vmem:[#allocation7 + $0x110] sm:$0xff]  ;;  %v2183_v52 = vpack.c.bf16 %v986_v47, %v982_v46 }
 0x105   : > { %2144 = vmatprep.subr.bf16.mxu1 %v2143_v63  ;;  %v954_v63 = vld [vmem:[#allocation7 + $0x168] sm:$0xff]  ;;  %v2165_v2 = vpack.c.bf16 %v945_v58, %v941_v57  ;;  %v2293_v3 = vpack.c.bf16 %v947_v61, %v943_v59  ;;  %v987_v57 = vld [vmem:[#allocation7 + $0x270] sm:$0xff]  ;;  %v996_v61 = vld [vmem:[#allocation7 + $0x2b8] sm:$0xff] }
 0x106   : > { %v2167_v4 = vpack.c.bf16 %v954_v63, %v950_v62  ;;  %v990_v58 = vld [vmem:[#allocation7 + $0x288] sm:$0xff] }
 0x107   : > { %2018 = vmatpush1.bf16.msra.mxu0 %v2017_v5  ;;  %v949_v5 = vld [vmem:[#allocation7 + $0x140] sm:$0xff]  ;;  %v994_v59 = vld [vmem:[#allocation7 + $0x2a8] sm:$0xff] }
 0x108   : > { %2146 = vmatpush1.bf16.msra.mxu1 %v2145_v6  ;;  %2148 = vmatprep.subr.bf16.mxu0 %v2147_v7  ;;  %v953_v6 = vld [vmem:[#allocation7 + $0x160] sm:$0xff]  ;;  %v951_v7 = vld [vmem:[#allocation7 + $0x150] sm:$0xff]  ;;  %v2187_v0 = vpack.c.bf16 %v994_v59, %v990_v58  ;;  %v1032_v58 = vld [vmem:[#allocation7 + $0x3d8] sm:$0xff] }
 0x109   : > { %2276 = vmatprep.subr.bf16.mxu1 %v2275_v11  ;;  %v962_v11 = vld [vmem:[#allocation7 + $0x1a8] sm:$0xff]  ;;  %v2169_v14 = vpack.c.bf16 %v953_v6, %v949_v5  ;;  %v2297_v15 = vpack.c.bf16 %v955_v9, %v951_v7  ;;  %v995_v5 = vld [vmem:[#allocation7 + $0x2b0] sm:$0xff]  ;;  %v1004_v9 = vld [vmem:[#allocation7 + $0x2f8] sm:$0xff] }
 0x10a   : > { %757 = vmatmul.mubr.f32.vlgmr.msra.gmra.mrb[0].mxu0 %v341_v17  ;;  %v2171_v16 = vpack.c.bf16 %v962_v11, %v958_v10  ;;  %v998_v6 = vld [vmem:[#allocation7 + $0x2c8] sm:$0xff] }
 0x10b   : > { %899 = vmatmul.mubr.f32.vlgmr.msra.gmra.mrb[0].mxu1 %v341_v17  ;;  %2150 = vmatpush1.bf16.msra.mxu0 %v2149_v18  ;;  %v957_v17 = vld [vmem:[#allocation7 + $0x180] sm:$0xff]  ;;  %v1002_v7 = vld [vmem:[#allocation7 + $0x2e8] sm:$0xff] }
 0x10c   : > { %2278 = vmatpush1.bf16.msra.mxu1 %v2277_v19  ;;  %2152 = vmatprep.subr.bf16.mxu0 %v2151_v20  ;;  %v961_v18 = vld [vmem:[#allocation7 + $0x1a0] sm:$0xff]  ;;  %v959_v19 = vld [vmem:[#allocation7 + $0x190] sm:$0xff]  ;;  %v2299_v20 = vpack.c.bf16 %v964_v13, %v960_v12  ;;  %v2191_v12 = vpack.c.bf16 %v1002_v7, %v998_v6  ;;  %v1040_v6 = vld [vmem:[#allocation7 + $0x418] sm:$0xff] }
 0x10d   : > { %2280 = vmatprep.subr.bf16.mxu1 %v2279_v24  ;;  %v968_v24 = vld [vmem:[#allocation7 + $0x1d8] sm:$0xff]  ;;  %v2173_v26 = vpack.c.bf16 %v961_v18, %v957_v17  ;;  %v2301_v27 = vpack.c.bf16 %v963_v21, %v959_v19  ;;  %v997_v13 = vld [vmem:[#allocation7 + $0x2c0] sm:$0xff]  ;;  %v1003_v17 = vld [vmem:[#allocation7 + $0x2f0] sm:$0xff] }
 0x10e   : > { %v1006_v18 = vld [vmem:[#allocation7 + $0x308] sm:$0xff]  ;;  %v1012_v21 = vld [vmem:[#allocation7 + $0x338] sm:$0xff] }
 0x10f   : > { %2154 = vmatpush1.bf16.msra.mxu0 %v2153_v30  ;;  %v969_v30 = vld [vmem:[#allocation7 + $0x1e0] sm:$0xff]  ;;  %v1010_v19 = vld [vmem:[#allocation7 + $0x328] sm:$0xff] }
 0x110   : > { %2282 = vmatpush1.bf16.msra.mxu1 %v2281_v31  ;;  %2156 = vmatprep.subr.bf16.mxu0 %v2155_v32  ;;  %v967_v31 = vld [vmem:[#allocation7 + $0x1d0] sm:$0xff]  ;;  %v2303_v32 = vpack.c.bf16 %v972_v25, %v968_v24  ;;  %v2177_v38 = vpack.c.bf16 %v969_v30, %v965_v29  ;;  %v2195_v24 = vpack.c.bf16 %v1010_v19, %v1006_v18  ;;  %v1005_v25 = vld [vmem:[#allocation7 + $0x300] sm:$0xff]  ;;  %v1014_v30 = vld [vmem:[#allocation7 + $0x348] sm:$0xff] }
 0x111   : > { %2284 = vmatprep.subr.bf16.mxu1 %v2283_v36  ;;  %v976_v36 = vld [vmem:[#allocation7 + $0x218] sm:$0xff]  ;;  %v2305_v39 = vpack.c.bf16 %v971_v33, %v967_v31  ;;  %v1011_v29 = vld [vmem:[#allocation7 + $0x330] sm:$0xff]  ;;  %v1018_v31 = vld [vmem:[#allocation7 + $0x368] sm:$0xff] }
 0x112   : > { %v1020_v33 = vld [vmem:[#allocation7 + $0x378] sm:$0xff] }
 0x113   : > { %2158 = vmatpush1.bf16.msra.mxu0 %v2157_v42  ;;  %v977_v42 = vld [vmem:[#allocation7 + $0x220] sm:$0xff] }
 0x114   : > { %2286 = vmatpush1.bf16.msra.mxu1 %v2285_v43  ;;  %2160 = vmatprep.subr.bf16.mxu0 %v2159_v44  ;;  %v975_v43 = vld [vmem:[#allocation7 + $0x210] sm:$0xff]  ;;  %v2307_v44 = vpack.c.bf16 %v980_v37, %v976_v36  ;;  %v2181_v50 = vpack.c.bf16 %v977_v42, %v973_v41  ;;  %v2199_v36 = vpack.c.bf16 %v1018_v31, %v1014_v30  ;;  %v1013_v37 = vld [vmem:[#allocation7 + $0x340] sm:$0xff]  ;;  %v1022_v42 = vld [vmem:[#allocation7 + $0x388] sm:$0xff] }
 0x115   : > { %2288 = vmatprep.subr.bf16.mxu1 %v2287_v48  ;;  %v984_v48 = vld [vmem:[#allocation7 + $0x258] sm:$0xff]  ;;  %v2309_v51 = vpack.c.bf16 %v979_v45, %v975_v43  ;;  %v1019_v41 = vld [vmem:[#allocation7 + $0x370] sm:$0xff]  ;;  %v1026_v43 = vld [vmem:[#allocation7 + $0x3a8] sm:$0xff] }
 0x116   : > { %v1028_v45 = vld [vmem:[#allocation7 + $0x3b8] sm:$0xff]  ;;  %v1050_v31 = vld [vmem:[#allocation7 + $0x468] sm:$0xff] }
 0x117   : > { %2162 = vmatpush1.bf16.msra.mxu0 %v2161_v54  ;;  %v985_v54 = vld [vmem:[#allocation7 + $0x260] sm:$0xff] }
 0x118   : > { %2290 = vmatpush1.bf16.msra.mxu1 %v2289_v55  ;;  %2164 = vmatprep.subr.bf16.mxu0 %v2163_v56  ;;  %v983_v55 = vld [vmem:[#allocation7 + $0x250] sm:$0xff]  ;;  %v2311_v56 = vpack.c.bf16 %v988_v49, %v984_v48  ;;  %v2185_v62 = vpack.c.bf16 %v985_v54, %v981_v53  ;;  %v2203_v48 = vpack.c.bf16 %v1026_v43, %v1022_v42  ;;  %v1021_v49 = vld [vmem:[#allocation7 + $0x380] sm:$0xff]  ;;  %v1054_v42 = vld [vmem:[#allocation7 + $0x488] sm:$0xff] }
 0x119   : > { %2292 = vmatprep.subr.bf16.mxu1 %v2291_v60  ;;  %v992_v60 = vld [vmem:[#allocation7 + $0x298] sm:$0xff]  ;;  %v2313_v63 = vpack.c.bf16 %v987_v57, %v983_v55  ;;  %v1027_v53 = vld [vmem:[#allocation7 + $0x3b0] sm:$0xff]  ;;  %v1034_v57 = vld [vmem:[#allocation7 + $0x3e8] sm:$0xff] }
 0x11b   : > { %2166 = vmatpush1.bf16.msra.mxu0 %v2165_v2  ;;  %v993_v2 = vld [vmem:[#allocation7 + $0x2a0] sm:$0xff] }
 0x11c   : > { %2294 = vmatpush1.bf16.msra.mxu1 %v2293_v3  ;;  %2168 = vmatprep.subr.bf16.mxu0 %v2167_v4  ;;  %v991_v3 = vld [vmem:[#allocation7 + $0x290] sm:$0xff]  ;;  %v2315_v4 = vpack.c.bf16 %v996_v61, %v992_v60  ;;  %v2189_v10 = vpack.c.bf16 %v993_v2, %v989_v1  ;;  %v1036_v60 = vld [vmem:[#allocation7 + $0x3f8] sm:$0xff]  ;;  %v1029_v61 = vld [vmem:[#allocation7 + $0x3c0] sm:$0xff] }
 0x11d   : > { %2296 = vmatprep.subr.bf16.mxu1 %v2295_v8  ;;  %v1000_v8 = vld [vmem:[#allocation7 + $0x2d8] sm:$0xff]  ;;  %v2317_v11 = vpack.c.bf16 %v995_v5, %v991_v3  ;;  %v1031_v1 = vld [vmem:[#allocation7 + $0x3d0] sm:$0xff]  ;;  %v1042_v5 = vld [vmem:[#allocation7 + $0x428] sm:$0xff] }
 0x11e   : > { %v1035_v2 = vld [vmem:[#allocation7 + $0x3f0] sm:$0xff] }
 0x11f   : > { %2170 = vmatpush1.bf16.msra.mxu0 %v2169_v14  ;;  %v1001_v14 = vld [vmem:[#allocation7 + $0x2e0] sm:$0xff]  ;;  %v2337_v3 = vpack.c.bf16 %v1035_v2, %v1031_v1 }
 0x120   : > { %2298 = vmatpush1.bf16.msra.mxu1 %v2297_v15  ;;  %2172 = vmatprep.subr.bf16.mxu0 %v2171_v16  ;;  %v999_v15 = vld [vmem:[#allocation7 + $0x2d0] sm:$0xff]  ;;  %v2319_v16 = vpack.c.bf16 %v1004_v9, %v1000_v8  ;;  %v2193_v22 = vpack.c.bf16 %v1001_v14, %v997_v13  ;;  %v1044_v8 = vld [vmem:[#allocation7 + $0x438] sm:$0xff]  ;;  %v3021_v13 = vld [vmem:[%s3106_s2] sm:$0xf] }
 0x121   : > { %2300 = vmatprep.subr.bf16.mxu1 %v2299_v20  ;;  %v1008_v20 = vld [vmem:[#allocation7 + $0x318] sm:$0xff]  ;;  %v2321_v23 = vpack.c.bf16 %v1003_v17, %v999_v15  ;;  %v2339_v9 = vpack.c.bf16 %v1044_v8, %v1040_v6  ;;  %v1074_v6 = vld [vmem:[#allocation7 + $0x528] sm:$0xff] }
 0x122   : > { %v1076_v8 = vld [vmem:[#allocation7 + $0x538] sm:$0xff] }
 0x123   : > { %2174 = vmatpush1.bf16.msra.mxu0 %v2173_v26  ;;  %v1009_v26 = vld [vmem:[#allocation7 + $0x320] sm:$0xff] }
 0x124   : > { %2302 = vmatpush1.bf16.msra.mxu1 %v2301_v27  ;;  %2176 = vmatprep.subr.bf16.mxu0 %v2175_v28  ;;  %v1007_v27 = vld [vmem:[#allocation7 + $0x310] sm:$0xff]  ;;  %v2323_v28 = vpack.c.bf16 %v1012_v21, %v1008_v20  ;;  %v2197_v34 = vpack.c.bf16 %v1009_v26, %v1005_v25  ;;  %v1037_v20 = vld [vmem:[#allocation7 + $0x400] sm:$0xff] }
 0x125   : > { %2304 = vmatprep.subr.bf16.mxu1 %v2303_v32  ;;  %v1016_v32 = vld [vmem:[#allocation7 + $0x358] sm:$0xff]  ;;  %v2325_v35 = vpack.c.bf16 %v1011_v29, %v1007_v27  ;;  %v1039_v25 = vld [vmem:[#allocation7 + $0x410] sm:$0xff]  ;;  %v1046_v29 = vld [vmem:[#allocation7 + $0x448] sm:$0xff] }
 0x126   : > { %v1043_v26 = vld [vmem:[#allocation7 + $0x430] sm:$0xff]  ;;  %v2215_v43 = vpack.c.bf16 %v1050_v31, %v1046_v29  ;;  %v1077_v29 = vld [vmem:[#allocation7 + $0x540] sm:$0xff] }
 0x127   : > { %2178 = vmatpush1.bf16.msra.mxu0 %v2177_v38  ;;  %v1017_v38 = vld [vmem:[#allocation7 + $0x360] sm:$0xff] }
 0x128   : > { %2306 = vmatpush1.bf16.msra.mxu1 %v2305_v39  ;;  %2180 = vmatprep.subr.bf16.mxu0 %v2179_v40  ;;  %v1015_v39 = vld [vmem:[#allocation7 + $0x350] sm:$0xff]  ;;  %v2327_v40 = vpack.c.bf16 %v1020_v33, %v1016_v32  ;;  %v2201_v46 = vpack.c.bf16 %v1017_v38, %v1013_v37  ;;  %v1048_v32 = vld [vmem:[#allocation7 + $0x458] sm:$0xff]  ;;  %v1045_v37 = vld [vmem:[#allocation7 + $0x440] sm:$0xff] }
 0x129   : > { %2308 = vmatprep.subr.bf16.mxu1 %v2307_v44  ;;  %v1024_v44 = vld [vmem:[#allocation7 + $0x398] sm:$0xff]  ;;  %v2329_v47 = vpack.c.bf16 %v1019_v41, %v1015_v39  ;;  %v1049_v38 = vld [vmem:[#allocation7 + $0x460] sm:$0xff]  ;;  %v1051_v41 = vld [vmem:[#allocation7 + $0x470] sm:$0xff] }
 0x12a   : > { %v1052_v33 = vld [vmem:[#allocation7 + $0x478] sm:$0xff] }
 0x12b   : > { %2182 = vmatpush1.bf16.msra.mxu0 %v2181_v50  ;;  %v1025_v50 = vld [vmem:[#allocation7 + $0x3a0] sm:$0xff] }
 0x12c   : > { %2310 = vmatpush1.bf16.msra.mxu1 %v2309_v51  ;;  %2184 = vmatprep.subr.bf16.mxu0 %v2183_v52  ;;  %v2331_v51 = vpack.c.bf16 %v1028_v45, %v1024_v44  ;;  %v1023_v52 = vld [vmem:[#allocation7 + $0x390] sm:$0xff]  ;;  %v2205_v54 = vpack.c.bf16 %v1025_v50, %v1021_v49  ;;  %v2343_v44 = vpack.c.bf16 %v1052_v33, %v1048_v32  ;;  %v1058_v45 = vld [vmem:[#allocation7 + $0x4a8] sm:$0xff] }
 0x12d   : > { %2312 = vmatprep.subr.bf16.mxu1 %v2311_v56  ;;  %v2333_v55 = vpack.c.bf16 %v1027_v53, %v1023_v52  ;;  %v1030_v56 = vld [vmem:[#allocation7 + $0x3c8] sm:$0xff]  ;;  %v2217_v49 = vpack.c.bf16 %v1049_v38, %v1045_v37  ;;  %v1057_v52 = vld [vmem:[#allocation7 + $0x4a0] sm:$0xff]  ;;  %v2219_v53 = vpack.c.bf16 %v1058_v45, %v1054_v42  ;;  %v1079_v33 = vld [vmem:[#allocation7 + $0x550] sm:$0xff] }
 0x12e   : > { %v2207_v59 = vpack.c.bf16 %v1034_v57, %v1030_v56  ;;  %v1059_v56 = vld [vmem:[#allocation7 + $0x4b0] sm:$0xff]  ;;  %v1062_v57 = vld [vmem:[#allocation7 + $0x4c8] sm:$0xff]  ;;  %v1088_v37 = vld [vmem:[#allocation7 + $0x598] sm:$0xff] }
 0x12f   : > { %2186 = vmatpush1.bf16.msra.mxu0 %v2185_v62  ;;  %v1033_v62 = vld [vmem:[#allocation7 + $0x3e0] sm:$0xff]  ;;  %v1092_v38 = vld [vmem:[#allocation7 + $0x5b8] sm:$0xff]  ;;  %v1087_v45 = vld [vmem:[#allocation7 + $0x590] sm:$0xff] }
 0x130   : > { %2314 = vmatpush1.bf16.msra.mxu1 %v2313_v63  ;;  %2188 = vmatprep.subr.bf16.mxu0 %v2187_v0  ;;  %v2335_v63 = vpack.c.bf16 %v1036_v60, %v1032_v58  ;;  %v2209_v0 = vpack.c.bf16 %v1033_v62, %v1029_v61  ;;  %v1066_v58 = vld [vmem:[#allocation7 + $0x4e8] sm:$0xff]  ;;  %v1068_v60 = vld [vmem:[#allocation7 + $0x4f8] sm:$0xff]  ;;  %v1089_v42 = vld [vmem:[#allocation7 + $0x5a0] sm:$0xff] }
 0x131   : > { %2316 = vmatprep.subr.bf16.mxu1 %v2315_v4  ;;  %v1038_v4 = vld [vmem:[#allocation7 + $0x408] sm:$0xff]  ;;  %v2223_v1 = vpack.c.bf16 %v1066_v58, %v1062_v57  ;;  %v1095_v57 = vld [vmem:[#allocation7 + $0x5d0] sm:$0xff] }
 0x132   : > { %v2211_v7 = vpack.c.bf16 %v1042_v5, %v1038_v4  ;;  %v1067_v4 = vld [vmem:[#allocation7 + $0x4f0] sm:$0xff]  ;;  %v1070_v5 = vld [vmem:[#allocation7 + $0x508] sm:$0xff] }
 0x133   : > { %2190 = vmatpush1.bf16.msra.mxu0 %v2189_v10  ;;  %v601_v10 = vlaneseq  ;;  %v1099_v58 = vld [vmem:[#allocation7 + $0x5f0] sm:$0xff] }
 0x134   : > { %2318 = vmatpush1.bf16.msra.mxu1 %v2317_v11  ;;  %2192 = vmatprep.subr.bf16.mxu0 %v2191_v12 }
 0x135   : > { %2320 = vmatprep.subr.bf16.mxu1 %v2319_v16  ;;  %v3015_v11 = vshrl.u32 %v601_v10, 7 }
 0x137   : > { %2194 = vmatpush1.bf16.msra.mxu0 %v2193_v22  ;;  %v603_v12 = vsub.s32 0, %v3015_v11  ;;  %v607_v14 = vsub.s32 1, %v3015_v11  ;;  %v615_v15 = vsub.s32 3, %v3015_v11 }
 0x138   : > { %2322 = vmatpush1.bf16.msra.mxu1 %v2321_v23  ;;  %2196 = vmatprep.subr.bf16.mxu0 %v2195_v24  ;;  %v1041_v24 = vld [vmem:[#allocation7 + $0x420] sm:$0xff] }
 0x139   : > { %2324 = vmatprep.subr.bf16.mxu1 %v2323_v28  ;;  %v604_v16 = vrot.slane %v3021_v13, %v603_v12  ;;  %v608_v17 = vrot.slane %v3021_v13, %v607_v14  ;;  %v616_v18 = vrot.slane %v3021_v13, %v615_v15 }
 0x13b   : > { %2198 = vmatpush1.bf16.msra.mxu0 %v2197_v34 }
 0x13c   : > { %2326 = vmatpush1.bf16.msra.mxu1 %v2325_v35  ;;  %2200 = vmatprep.subr.bf16.mxu0 %v2199_v36  ;;  %v2213_v35 = vpack.c.bf16 %v1041_v24, %v1037_v20  ;;  %v2341_v36 = vpack.c.bf16 %v1043_v26, %v1039_v25  ;;  %v1071_v20 = vld [vmem:[#allocation7 + $0x510] sm:$0xff]  ;;  %v1082_v24 = vld [vmem:[#allocation7 + $0x568] sm:$0xff]  ;;  %v1080_v25 = vld [vmem:[#allocation7 + $0x558] sm:$0xff] }
 0x13d   : > { %2328 = vmatprep.subr.bf16.mxu1 %v2327_v40  ;;  %v1047_v40 = vld [vmem:[#allocation7 + $0x450] sm:$0xff]  ;;  %v1084_v26 = vld [vmem:[#allocation7 + $0x578] sm:$0xff] }
 0x13e   : > { %v2345_v50 = vpack.c.bf16 %v1051_v41, %v1047_v40  ;;  %v2359_v32 = vpack.c.bf16 %v1084_v26, %v1080_v25  ;;  %v1085_v41 = vld [vmem:[#allocation7 + $0x580] sm:$0xff]  ;;  %v1118_v25 = vld [vmem:[#allocation7 + $0x688] sm:$0xff] }
 0x13f   : > { %2202 = vmatpush1.bf16.msra.mxu0 %v2201_v46  ;;  %v1056_v46 = vld [vmem:[#allocation7 + $0x498] sm:$0xff]  ;;  %v1122_v26 = vld [vmem:[#allocation7 + $0x6a8] sm:$0xff] }
 0x140   : > { %2330 = vmatpush1.bf16.msra.mxu1 %v2329_v47  ;;  %2204 = vmatprep.subr.bf16.mxu0 %v2203_v48  ;;  %v1060_v47 = vld [vmem:[#allocation7 + $0x4b8] sm:$0xff] }
 0x141   : > { %2332 = vmatprep.subr.bf16.mxu1 %v2331_v51  ;;  %v1053_v51 = vld [vmem:[#allocation7 + $0x480] sm:$0xff] }
 0x142   : > { %v2221_v61 = vpack.c.bf16 %v1057_v52, %v1053_v51  ;;  %v2237_v51 = vpack.c.bf16 %v1089_v42, %v1085_v41 }
 0x143   : > { %2206 = vmatpush1.bf16.msra.mxu0 %v2205_v54  ;;  %v2347_v54 = vpack.c.bf16 %v1060_v47, %v1056_v46  ;;  %v1091_v46 = vld [vmem:[#allocation7 + $0x5b0] sm:$0xff]  ;;  %v1094_v47 = vld [vmem:[#allocation7 + $0x5c8] sm:$0xff] }
 0x144   : > { %2334 = vmatpush1.bf16.msra.mxu1 %v2333_v55  ;;  %2208 = vmatprep.subr.bf16.mxu0 %v2207_v59  ;;  %v1055_v55 = vld [vmem:[#allocation7 + $0x490] sm:$0xff]  ;;  %v1064_v59 = vld [vmem:[#allocation7 + $0x4d8] sm:$0xff]  ;;  %v2365_v52 = vpack.c.bf16 %v1091_v46, %v1087_v45 }
 0x145   : > { %2336 = vmatprep.subr.bf16.mxu1 %v2335_v63  ;;  %v2349_v62 = vpack.c.bf16 %v1059_v56, %v1055_v55  ;;  %v1061_v63 = vld [vmem:[#allocation7 + $0x4c0] sm:$0xff]  ;;  %v2351_v2 = vpack.c.bf16 %v1068_v60, %v1064_v59  ;;  %v1102_v59 = vld [vmem:[#allocation7 + $0x608] sm:$0xff] }
 0x146   : > { %v1106_v60 = vld [vmem:[#allocation7 + $0x628] sm:$0xff] }
 0x147   : > { %2210 = vmatpush1.bf16.msra.mxu0 %v2209_v0  ;;  %v1065_v0 = vld [vmem:[#allocation7 + $0x4e0] sm:$0xff] }
 0x148   : > { %2338 = vmatpush1.bf16.msra.mxu1 %v2337_v3  ;;  %2212 = vmatprep.subr.bf16.mxu0 %v2211_v7  ;;  %v1063_v3 = vld [vmem:[#allocation7 + $0x4d0] sm:$0xff]  ;;  %v1072_v7 = vld [vmem:[#allocation7 + $0x518] sm:$0xff] }
 0x149   : > { %2340 = vmatprep.subr.bf16.mxu1 %v2339_v9  ;;  %v2225_v9 = vpack.c.bf16 %v1065_v0, %v1061_v63  ;;  %v2353_v10 = vpack.c.bf16 %v1067_v4, %v1063_v3  ;;  %v2369_v0 = vpack.c.bf16 %v1099_v58, %v1095_v57  ;;  %v2243_v3 = vpack.c.bf16 %v1106_v60, %v1102_v59  ;;  %v1135_v59 = vld [vmem:[#allocation7 + $0x710] sm:$0xff] }
 0x14a   : > { %v1139_v60 = vld [vmem:[#allocation7 + $0x730] sm:$0xff] }
 0x1dd   : > { %v758_v19 = vpop.f32.mrb[0].mxu0 }
 0x1de   : > { %v2467_v21 = vadd.f32 %v758_v19, %v604_v16  ;;  %v3034_v22 = vpop.f32.mrb[0].mxu1  ;;  %v760_v23 = vpop.f32.mrb[1].mxu0  ;;  %v1069_v16 = vld [vmem:[#allocation7 + $0x500] sm:$0xff]  ;;  %v2355_v19 = vpack.c.bf16 %v1076_v8, %v1072_v7  ;;  %v1110_v7 = vld [vmem:[#allocation7 + $0x648] sm:$0xff] }
 0x1df   : > { %v2468_v27 = vadd.f32 %v760_v23, %v608_v17  ;;  %v902_v28 = vpop.f32.mrb[1].mxu1  ;;  %v1073_v17 = vld [vmem:[#allocation7 + $0x520] sm:$0xff]  ;;  %v1078_v23 = vld [vmem:[#allocation7 + $0x548] sm:$0xff] }
 0x1e0   : > { %v2470_v30 = vadd.f32 %v902_v28, %v616_v18  ;;  %v905_v39 = vmax.f32 %v2467_v21, 0.0  ;;  %v2227_v18 = vpack.c.bf16 %v1074_v6, %v1070_v5  ;;  %v1075_v21 = vld [vmem:[#allocation7 + $0x530] sm:$0xff]  ;;  %v2231_v31 = vpack.c.bf16 %v1082_v24, %v1078_v23  ;;  %v1114_v8 = vld [vmem:[#allocation7 + $0x668] sm:$0xff] }
 0x1e1   : > { %v906_v34 = vmax.f32 %v2468_v27, 0.0  ;;  %v2229_v27 = vpack.c.bf16 %v1073_v17, %v1069_v16  ;;  %v2357_v28 = vpack.c.bf16 %v1075_v21, %v1071_v20  ;;  %v1103_v5 = vld [vmem:[#allocation7 + $0x610] sm:$0xff]  ;;  %v2247_v20 = vpack.c.bf16 %v1114_v8, %v1110_v7 }
 0x1e2   : > { %v908_v48 = vmax.f32 %v2470_v30, 0.0  ;;  %v1081_v30 = vld [vmem:[#allocation7 + $0x560] sm:$0xff]  ;;  %v1107_v6 = vld [vmem:[#allocation7 + $0x630] sm:$0xff] }
 0x1e3   : > { %1251 = vmatprep.mubr.f32.mxu0 %v906_v34  ;;  %1393 = vmatprep.mubr.f32.mxu1 %v906_v34  ;;  %v1083_v34 = vld [vmem:[#allocation7 + $0x570] sm:$0xff]  ;;  %v2373_v17 = vpack.c.bf16 %v1107_v6, %v1103_v5 }
 0x1e4   : > { %1252 = vmatmul.mubr.f32.vlgmr.msra.gmra.mrb[2].mxu0 %v905_v39  ;;  %1394 = vmatmul.mubr.f32.vlgmr.msra.gmra.mrb[2].mxu1 %v905_v39  ;;  %v2233_v39 = vpack.c.bf16 %v1081_v30, %v1077_v29  ;;  %v2361_v40 = vpack.c.bf16 %v1083_v34, %v1079_v33  ;;  %v1111_v23 = vld [vmem:[#allocation7 + $0x650] sm:$0xff]  ;;  %v2251_v33 = vpack.c.bf16 %v1122_v26, %v1118_v25 }
 0x1e5   : > { %2214 = vmatpush1.bf16.msra.mxu0 %v2213_v35  ;;  %2342 = vmatpush1.bf16.msra.mxu1 %v2341_v36  ;;  %v1086_v35 = vld [vmem:[#allocation7 + $0x588] sm:$0xff]  ;;  %v1115_v24 = vld [vmem:[#allocation7 + $0x670] sm:$0xff] }
 0x1e6   : > { %1322 = vmatprep.mubr.f32.mxu0 %v908_v48  ;;  %1464 = vmatprep.mubr.f32.mxu1 %v908_v48  ;;  %v1090_v36 = vld [vmem:[#allocation7 + $0x5a8] sm:$0xff]  ;;  %v2377_v30 = vpack.c.bf16 %v1115_v24, %v1111_v23  ;;  %v1143_v7 = vld [vmem:[#allocation7 + $0x750] sm:$0xff]  ;;  %v611_v23 = vsub.s32 2, %v3015_v11 }
 0x1e7   : > { %2216 = vmatprep.subr.bf16.mxu0 %v2215_v43  ;;  %2344 = vmatprep.subr.bf16.mxu1 %v2343_v44  ;;  %v2235_v43 = vpack.c.bf16 %v1090_v36, %v1086_v35  ;;  %v2363_v44 = vpack.c.bf16 %v1092_v38, %v1088_v37  ;;  %v1098_v48 = vld [vmem:[#allocation7 + $0x5e8] sm:$0xff]  ;;  %v1119_v35 = vld [vmem:[#allocation7 + $0x690] sm:$0xff] }
 0x1e8   : > { %v2239_v55 = vpack.c.bf16 %v1098_v48, %v1094_v47  ;;  %v1123_v36 = vld [vmem:[#allocation7 + $0x6b0] sm:$0xff]  ;;  %v1126_v37 = vld [vmem:[#allocation7 + $0x6c8] sm:$0xff] }
 0x1e9   : > { %2218 = vmatpush1.bf16.msra.mxu0 %v2217_v49  ;;  %2346 = vmatpush1.bf16.msra.mxu1 %v2345_v50  ;;  %v1096_v49 = vld [vmem:[#allocation7 + $0x5d8] sm:$0xff]  ;;  %v1130_v38 = vld [vmem:[#allocation7 + $0x6e8] sm:$0xff]  ;;  %v2381_v42 = vpack.c.bf16 %v1123_v36, %v1119_v35  ;;  %v1127_v47 = vld [vmem:[#allocation7 + $0x6d0] sm:$0xff]  ;;  %v612_v36 = vrot.slane %v3021_v13, %v611_v23 }
 0x1ea   : > { %2220 = vmatprep.subr.bf16.mxu0 %v2219_v53  ;;  %2348 = vmatprep.subr.bf16.mxu1 %v2347_v54  ;;  %v1100_v50 = vld [vmem:[#allocation7 + $0x5f8] sm:$0xff]  ;;  %v1093_v53 = vld [vmem:[#allocation7 + $0x5c0] sm:$0xff]  ;;  %v2255_v45 = vpack.c.bf16 %v1130_v38, %v1126_v37  ;;  %v1131_v48 = vld [vmem:[#allocation7 + $0x6f0] sm:$0xff] }
 0x1eb   : > { %v1097_v54 = vld [vmem:[#allocation7 + $0x5e0] sm:$0xff]  ;;  %v2367_v56 = vpack.c.bf16 %v1100_v50, %v1096_v49  ;;  %v1134_v49 = vld [vmem:[#allocation7 + $0x708] sm:$0xff]  ;;  %v1147_v8 = vld [vmem:[#allocation7 + $0x770] sm:$0xff] }
 0x1ec   : > { %v2241_v63 = vpack.c.bf16 %v1097_v54, %v1093_v53  ;;  %v1138_v50 = vld [vmem:[#allocation7 + $0x728] sm:$0xff]  ;;  %v2385_v54 = vpack.c.bf16 %v1131_v48, %v1127_v47  ;;  %v1151_v26 = vld [vmem:[#allocation7 + $0x790] sm:$0xff]  ;;  %v1161_v35 = vld [vmem:[#allocation7 + $0x7e0] sm:$0xff] }
 0x1ed   : > { %2222 = vmatpush1.bf16.msra.mxu0 %v2221_v61  ;;  %2350 = vmatpush1.bf16.msra.mxu1 %v2349_v62  ;;  %v1104_v61 = vld [vmem:[#allocation7 + $0x618] sm:$0xff]  ;;  %v2259_v57 = vpack.c.bf16 %v1138_v50, %v1134_v49  ;;  %v1475_v47 = vld [vmem:[#allocation8] sm:$0xff]  ;;  %v1476_v48 = vld [vmem:[#allocation8 + $0x8] sm:$0xff]  ;;  %v2469_v49 = vadd.f32 %v3034_v22, %v612_v36 }
 0x1ee   : > { %2224 = vmatprep.subr.bf16.mxu0 %v2223_v1  ;;  %2352 = vmatprep.subr.bf16.mxu1 %v2351_v2  ;;  %v1108_v62 = vld [vmem:[#allocation7 + $0x638] sm:$0xff]  ;;  %v1101_v1 = vld [vmem:[#allocation7 + $0x600] sm:$0xff] }
 0x1ef   : > { %v1105_v2 = vld [vmem:[#allocation7 + $0x620] sm:$0xff]  ;;  %v2371_v4 = vpack.c.bf16 %v1108_v62, %v1104_v61  ;;  %v1142_v61 = vld [vmem:[#allocation7 + $0x748] sm:$0xff] }
 0x1f0   : > { %v2245_v16 = vpack.c.bf16 %v1105_v2, %v1101_v1  ;;  %v1146_v62 = vld [vmem:[#allocation7 + $0x768] sm:$0xff]  ;;  %v2389_v2 = vpack.c.bf16 %v1139_v60, %v1135_v59  ;;  %v1477_v59 = vld [vmem:[#allocation8 + $0x10] sm:$0xff]  ;;  %v1478_v60 = vld [vmem:[#allocation8 + $0x18] sm:$0xff] }
 0x1f1   : > { %2226 = vmatpush1.bf16.msra.mxu0 %v2225_v9  ;;  %2354 = vmatpush1.bf16.msra.mxu1 %v2353_v10  ;;  %v1112_v9 = vld [vmem:[#allocation7 + $0x658] sm:$0xff]  ;;  %v2263_v5 = vpack.c.bf16 %v1146_v62, %v1142_v61  ;;  %v907_v61 = vmax.f32 %v2469_v49, 0.0 }
 0x1f2   : > { %2228 = vmatprep.subr.bf16.mxu0 %v2227_v18  ;;  %2356 = vmatprep.subr.bf16.mxu1 %v2355_v19  ;;  %v1116_v10 = vld [vmem:[#allocation7 + $0x678] sm:$0xff]  ;;  %v1109_v18 = vld [vmem:[#allocation7 + $0x640] sm:$0xff] }
 0x1f3   : > { %v1113_v19 = vld [vmem:[#allocation7 + $0x660] sm:$0xff]  ;;  %v2375_v21 = vpack.c.bf16 %v1116_v10, %v1112_v9  ;;  %v1150_v9 = vld [vmem:[#allocation7 + $0x788] sm:$0xff] }
 0x1f4   : > { %v2249_v29 = vpack.c.bf16 %v1113_v19, %v1109_v18  ;;  %v1154_v10 = vld [vmem:[#allocation7 + $0x7a8] sm:$0xff]  ;;  %v2393_v19 = vpack.c.bf16 %v1147_v8, %v1143_v7  ;;  %v1479_v7 = vld [vmem:[#allocation8 + $0x20] sm:$0xff] }
 0x1f5   : > { %2230 = vmatpush1.bf16.msra.mxu0 %v2229_v27  ;;  %2358 = vmatpush1.bf16.msra.mxu1 %v2357_v28  ;;  %v1120_v27 = vld [vmem:[#allocation7 + $0x698] sm:$0xff]  ;;  %v2267_v24 = vpack.c.bf16 %v1154_v10, %v1150_v9  ;;  %v1480_v8 = vld [vmem:[#allocation8 + $0x28] sm:$0xff] }
 0x1f6   : > { %2232 = vmatprep.subr.bf16.mxu0 %v2231_v31  ;;  %2360 = vmatprep.subr.bf16.mxu1 %v2359_v32  ;;  %v1124_v28 = vld [vmem:[#allocation7 + $0x6b8] sm:$0xff]  ;;  %v1117_v31 = vld [vmem:[#allocation7 + $0x680] sm:$0xff] }
 0x1f7   : > { %v1121_v32 = vld [vmem:[#allocation7 + $0x6a0] sm:$0xff]  ;;  %v2379_v34 = vpack.c.bf16 %v1124_v28, %v1120_v27  ;;  %v1155_v27 = vld [vmem:[#allocation7 + $0x7b0] sm:$0xff]  ;;  %v1158_v28 = vld [vmem:[#allocation7 + $0x7c8] sm:$0xff] }
 0x1f8   : > { %v2253_v41 = vpack.c.bf16 %v1121_v32, %v1117_v31  ;;  %v1164_v31 = vld [vmem:[#allocation7 + $0x7f8] sm:$0xff] }
 0x1f9   : > { %2234 = vmatpush1.bf16.msra.mxu0 %v2233_v39  ;;  %2362 = vmatpush1.bf16.msra.mxu1 %v2361_v40  ;;  %v1128_v39 = vld [vmem:[#allocation7 + $0x6d8] sm:$0xff] }
 0x1fa   : > { %2236 = vmatprep.subr.bf16.mxu0 %v2235_v43  ;;  %2364 = vmatprep.subr.bf16.mxu1 %v2363_v44  ;;  %v1132_v40 = vld [vmem:[#allocation7 + $0x6f8] sm:$0xff]  ;;  %v1125_v43 = vld [vmem:[#allocation7 + $0x6c0] sm:$0xff] }
 0x1fb   : > { %v1129_v44 = vld [vmem:[#allocation7 + $0x6e0] sm:$0xff]  ;;  %v2383_v46 = vpack.c.bf16 %v1132_v40, %v1128_v39  ;;  %v1159_v39 = vld [vmem:[#allocation7 + $0x7d0] sm:$0xff] }
 0x1fc   : > { %v2257_v53 = vpack.c.bf16 %v1129_v44, %v1125_v43  ;;  %v1163_v40 = vld [vmem:[#allocation7 + $0x7f0] sm:$0xff]  ;;  %v1523_v43 = vld [vmem:[#allocation8 + $0x180] sm:$0xff]  ;;  %v1524_v44 = vld [vmem:[#allocation8 + $0x188] sm:$0xff] }
 0x1fd   : > { %2238 = vmatpush1.bf16.msra.mxu0 %v2237_v51  ;;  %2366 = vmatpush1.bf16.msra.mxu1 %v2365_v52  ;;  %v1136_v51 = vld [vmem:[#allocation7 + $0x718] sm:$0xff]  ;;  %v2435_v50 = vpack.c.bf16 %v1524_v44, %v1523_v43  ;;  %v1516_v43 = vld [vmem:[#allocation8 + $0x148] sm:$0xff]  ;;  %v1501_v44 = vld [vmem:[#allocation8 + $0xd0] sm:$0xff] }
 0x1fe   : > { %2240 = vmatprep.subr.bf16.mxu0 %v2239_v55  ;;  %2368 = vmatprep.subr.bf16.mxu1 %v2367_v56  ;;  %v1140_v52 = vld [vmem:[#allocation7 + $0x738] sm:$0xff]  ;;  %v1133_v55 = vld [vmem:[#allocation7 + $0x700] sm:$0xff] }
 0x1ff   : > { %v1137_v56 = vld [vmem:[#allocation7 + $0x720] sm:$0xff]  ;;  %v2387_v58 = vpack.c.bf16 %v1140_v52, %v1136_v51  ;;  %v1508_v52 = vld [vmem:[#allocation8 + $0x108] sm:$0xff] }
 0x200   : > { %v2261_v1 = vpack.c.bf16 %v1137_v56, %v1133_v55  ;;  %v1507_v51 = vld [vmem:[#allocation8 + $0x100] sm:$0xff]  ;;  %v1525_v55 = vld [vmem:[#allocation8 + $0x190] sm:$0xff]  ;;  %v1526_v56 = vld [vmem:[#allocation8 + $0x198] sm:$0xff] }
 0x201   : > { %2242 = vmatpush1.bf16.msra.mxu0 %v2241_v63  ;;  %2370 = vmatpush1.bf16.msra.mxu1 %v2369_v0  ;;  %v1144_v63 = vld [vmem:[#allocation7 + $0x758] sm:$0xff]  ;;  %v2439_v62 = vpack.c.bf16 %v1526_v56, %v1525_v55  ;;  %v1503_v55 = vld [vmem:[#allocation8 + $0xe0] sm:$0xff]  ;;  %v1504_v56 = vld [vmem:[#allocation8 + $0xe8] sm:$0xff] }
 0x202   : > { %2244 = vmatprep.subr.bf16.mxu0 %v2243_v3  ;;  %2372 = vmatprep.subr.bf16.mxu1 %v2371_v4  ;;  %v1148_v0 = vld [vmem:[#allocation7 + $0x778] sm:$0xff]  ;;  %v1141_v3 = vld [vmem:[#allocation7 + $0x740] sm:$0xff] }
 0x203   : > { %v1145_v4 = vld [vmem:[#allocation7 + $0x760] sm:$0xff]  ;;  %v2391_v6 = vpack.c.bf16 %v1148_v0, %v1144_v63  ;;  %v1509_v63 = vld [vmem:[#allocation8 + $0x110] sm:$0xff]  ;;  %v1510_v0 = vld [vmem:[#allocation8 + $0x118] sm:$0xff] }
 0x204   : > { %v2265_v18 = vpack.c.bf16 %v1145_v4, %v1141_v3  ;;  %v1527_v3 = vld [vmem:[#allocation8 + $0x1a0] sm:$0xff]  ;;  %v1528_v4 = vld [vmem:[#allocation8 + $0x1a8] sm:$0xff] }
 0x205   : > { %2246 = vmatpush1.bf16.msra.mxu0 %v2245_v16  ;;  %2374 = vmatpush1.bf16.msra.mxu1 %v2373_v17  ;;  %v1152_v16 = vld [vmem:[#allocation7 + $0x798] sm:$0xff]  ;;  %v2443_v10 = vpack.c.bf16 %v1528_v4, %v1527_v3  ;;  %v1505_v4 = vld [vmem:[#allocation8 + $0xf0] sm:$0xff] }
 0x206   : > { %2248 = vmatprep.subr.bf16.mxu0 %v2247_v20  ;;  %2376 = vmatprep.subr.bf16.mxu1 %v2375_v21  ;;  %v1156_v17 = vld [vmem:[#allocation7 + $0x7b8] sm:$0xff]  ;;  %v1149_v20 = vld [vmem:[#allocation7 + $0x780] sm:$0xff] }
 0x207   : > { %v1153_v21 = vld [vmem:[#allocation7 + $0x7a0] sm:$0xff]  ;;  %v2395_v25 = vpack.c.bf16 %v1156_v17, %v1152_v16  ;;  %v1512_v17 = vld [vmem:[#allocation8 + $0x128] sm:$0xff] }
 0x208   : > { %v2269_v32 = vpack.c.bf16 %v1153_v21, %v1149_v20  ;;  %v1511_v16 = vld [vmem:[#allocation8 + $0x120] sm:$0xff]  ;;  %v1529_v20 = vld [vmem:[#allocation8 + $0x1b0] sm:$0xff]  ;;  %v1530_v21 = vld [vmem:[#allocation8 + $0x1b8] sm:$0xff] }
 0x209   : > { %2250 = vmatpush1.bf16.msra.mxu0 %v2249_v29  ;;  %2378 = vmatpush1.bf16.msra.mxu1 %v2377_v30  ;;  %v1162_v29 = vld [vmem:[#allocation7 + $0x7e8] sm:$0xff]  ;;  %v1160_v30 = vld [vmem:[#allocation7 + $0x7d8] sm:$0xff] }
 0x20a   : > { %2252 = vmatprep.subr.bf16.mxu0 %v2251_v33  ;;  %2380 = vmatprep.subr.bf16.mxu1 %v2379_v34  ;;  %v2397_v33 = vpack.c.bf16 %v1155_v27, %v1151_v26  ;;  %v1157_v34 = vld [vmem:[#allocation7 + $0x7c0] sm:$0xff]  ;;  %v2271_v37 = vpack.c.bf16 %v1162_v29, %v1158_v28  ;;  %v2399_v38 = vpack.c.bf16 %v1164_v31, %v1160_v30  ;;  %v1481_v26 = vld [vmem:[#allocation8 + $0x30] sm:$0xff]  ;;  %v1482_v27 = vld [vmem:[#allocation8 + $0x38] sm:$0xff] }
 0x20b   : > { %v2447_v29 = vpack.c.bf16 %v1530_v21, %v1529_v20  ;;  %v1513_v30 = vld [vmem:[#allocation8 + $0x130] sm:$0xff]  ;;  %v1514_v31 = vld [vmem:[#allocation8 + $0x138] sm:$0xff]  ;;  %v2417_v36 = vpack.c.bf16 %v1482_v27, %v1481_v26  ;;  %v1165_v21 = vld [vmem:[%s3108_s4] sm:$0xf] }
 0x20c   : > { %v1174_v26 = vrot.slane %v1165_v21, %v607_v14  ;;  %v1182_v27 = vrot.slane %v1165_v21, %v615_v15  ;;  %v1815_v15 = vld [vmem:[%s3110_s6] ss:$0 sm:$0xff] }
 0x20d   : > { %2254 = vmatpush1.bf16.msra.mxu0 %v2253_v41  ;;  %2382 = vmatpush1.bf16.msra.mxu1 %v2381_v42  ;;  %v1491_v41 = vld [vmem:[#allocation8 + $0x80] sm:$0xff]  ;;  %v1492_v42 = vld [vmem:[#allocation8 + $0x88] sm:$0xff] }
 0x20e   : > { %2256 = vmatprep.subr.bf16.mxu0 %v2255_v45  ;;  %2384 = vmatprep.subr.bf16.mxu1 %v2383_v46  ;;  %v2273_v45 = vpack.c.bf16 %v1161_v35, %v1157_v34  ;;  %v2401_v46 = vpack.c.bf16 %v1163_v40, %v1159_v39  ;;  %v2403_v13 = vpack.c.bf16 %v1492_v42, %v1491_v41  ;;  %v1531_v34 = vld [vmem:[#allocation8 + $0x1c0] sm:$0xff]  ;;  %v1532_v35 = vld [vmem:[#allocation8 + $0x1c8] sm:$0xff] }
 0x20f   : > { %v1484_v39 = vld [vmem:[#allocation8 + $0x48] sm:$0xff]  ;;  %v2451_v41 = vpack.c.bf16 %v1532_v35, %v1531_v34  ;;  %v1515_v42 = vld [vmem:[#allocation8 + $0x140] sm:$0xff] }
 0x210   : > { %v2453_v49 = vpack.c.bf16 %v1516_v43, %v1515_v42 }
 0x211   : > { %2258 = vmatpush1.bf16.msra.mxu0 %v2257_v53  ;;  %2386 = vmatpush1.bf16.msra.mxu1 %v2385_v54  ;;  %v1493_v53 = vld [vmem:[#allocation8 + $0x90] sm:$0xff]  ;;  %v1494_v54 = vld [vmem:[#allocation8 + $0x98] sm:$0xff] }
 0x212   : > { %2260 = vmatprep.subr.bf16.mxu0 %v2259_v57  ;;  %2388 = vmatprep.subr.bf16.mxu1 %v2387_v58  ;;  %v2405_v57 = vpack.c.bf16 %v1476_v48, %v1475_v47  ;;  %v2437_v58 = vpack.c.bf16 %v1508_v52, %v1507_v51  ;;  %v2407_v22 = vpack.c.bf16 %v1494_v54, %v1493_v53  ;;  %v1534_v47 = vld [vmem:[#allocation8 + $0x1d8] sm:$0xff]  ;;  %v1517_v53 = vld [vmem:[#allocation8 + $0x150] sm:$0xff] }
 0x213   : > { %v1518_v54 = vld [vmem:[#allocation8 + $0x158] sm:$0xff] }
 0x215   : > { %2262 = vmatpush1.bf16.msra.mxu0 %v2261_v1  ;;  %2390 = vmatpush1.bf16.msra.mxu1 %v2389_v2  ;;  %v1495_v1 = vld [vmem:[#allocation8 + $0xa0] sm:$0xff]  ;;  %v1496_v2 = vld [vmem:[#allocation8 + $0xa8] sm:$0xff] }
 0x216   : > { %2264 = vmatprep.subr.bf16.mxu0 %v2263_v5  ;;  %2392 = vmatprep.subr.bf16.mxu1 %v2391_v6  ;;  %v2409_v5 = vpack.c.bf16 %v1478_v60, %v1477_v59  ;;  %v2441_v6 = vpack.c.bf16 %v1510_v0, %v1509_v63  ;;  %v2411_v9 = vpack.c.bf16 %v1496_v2, %v1495_v1  ;;  %v1488_v63 = vld [vmem:[#allocation8 + $0x68] sm:$0xff]  ;;  %v1519_v0 = vld [vmem:[#allocation8 + $0x160] sm:$0xff] }
 0x217   : > { %v2457_v60 = vpack.c.bf16 %v1518_v54, %v1517_v53  ;;  %v1520_v2 = vld [vmem:[#allocation8 + $0x168] sm:$0xff] }
 0x218   : > { %v2461_v3 = vpack.c.bf16 %v1520_v2, %v1519_v0 }
 0x219   : > { %2266 = vmatpush1.bf16.msra.mxu0 %v2265_v18  ;;  %2394 = vmatpush1.bf16.msra.mxu1 %v2393_v19  ;;  %v1497_v18 = vld [vmem:[#allocation8 + $0xb0] sm:$0xff]  ;;  %v1498_v19 = vld [vmem:[#allocation8 + $0xb8] sm:$0xff] }
 0x21a   : > { %2268 = vmatprep.subr.bf16.mxu0 %v2267_v24  ;;  %2396 = vmatprep.subr.bf16.mxu1 %v2395_v25  ;;  %v2413_v24 = vpack.c.bf16 %v1480_v8, %v1479_v7  ;;  %v2445_v25 = vpack.c.bf16 %v1512_v17, %v1511_v16  ;;  %v2415_v28 = vpack.c.bf16 %v1498_v19, %v1497_v18  ;;  %v1538_v8 = vld [vmem:[#allocation8 + $0x1f8] sm:$0xff]  ;;  %v1521_v18 = vld [vmem:[#allocation8 + $0x170] sm:$0xff] }
 0x21b   : > { %v1522_v19 = vld [vmem:[#allocation8 + $0x178] sm:$0xff] }
 0x21c   : > { %v2465_v20 = vpack.c.bf16 %v1522_v19, %v1521_v18 }
 0x21d   : > { %2270 = vmatpush1.bf16.msra.mxu0 %v2269_v32  ;;  %2398 = vmatpush1.bf16.msra.mxu1 %v2397_v33  ;;  %v1499_v32 = vld [vmem:[#allocation8 + $0xc0] sm:$0xff]  ;;  %v1500_v33 = vld [vmem:[#allocation8 + $0xc8] sm:$0xff] }
 0x21e   : > { %2272 = vmatprep.subr.bf16.mxu0 %v2271_v37  ;;  %2400 = vmatprep.subr.bf16.mxu1 %v2399_v38  ;;  %v2449_v37 = vpack.c.bf16 %v1514_v31, %v1513_v30  ;;  %v1483_v38 = vld [vmem:[#allocation8 + $0x40] sm:$0xff]  ;;  %v2419_v40 = vpack.c.bf16 %v1500_v33, %v1499_v32 }
 0x21f   : > { %v2421_v48 = vpack.c.bf16 %v1484_v39, %v1483_v38 }
 0x221   : > { %2274 = vmatpush1.bf16.msra.mxu0 %v2273_v45  ;;  %2402 = vmatpush1.bf16.msra.mxu1 %v2401_v46  ;;  %v1502_v45 = vld [vmem:[#allocation8 + $0xd8] sm:$0xff]  ;;  %v1533_v46 = vld [vmem:[#allocation8 + $0x1d0] sm:$0xff] }
 0x222   : > { %2404 = vmatprep.subr.bf16.mxu0 %v2403_v13  ;;  %2436 = vmatprep.subr.bf16.mxu1 %v2435_v50  ;;  %v1485_v13 = vld [vmem:[#allocation8 + $0x50] sm:$0xff]  ;;  %v1486_v50 = vld [vmem:[#allocation8 + $0x58] sm:$0xff]  ;;  %v2423_v51 = vpack.c.bf16 %v1502_v45, %v1501_v44  ;;  %v2455_v52 = vpack.c.bf16 %v1534_v47, %v1533_v46 }
 0x223   : > { %v2425_v59 = vpack.c.bf16 %v1486_v50, %v1485_v13 }
 0x224   : > { %1323 = vmatmul.mubr.f32.vlgmr.msra.gmra.mrb[2].mxu0 %v907_v61  ;;  %1465 = vmatmul.mubr.f32.vlgmr.msra.gmra.mrb[2].mxu1 %v907_v61  ;;  %v2427_v61 = vpack.c.bf16 %v1504_v56, %v1503_v55 }
 0x225   : > { %2406 = vmatpush3.bf16.msra.mxu0 %v2405_v57  ;;  %2438 = vmatpush3.bf16.msra.mxu1 %v2437_v58  ;;  %v1535_v57 = vld [vmem:[#allocation8 + $0x1e0] sm:$0xff]  ;;  %v1536_v58 = vld [vmem:[#allocation8 + $0x1e8] sm:$0xff] }
 0x226   : > { %2408 = vmatprep.subr.bf16.mxu0 %v2407_v22  ;;  %2440 = vmatprep.subr.bf16.mxu1 %v2439_v62  ;;  %v2459_v22 = vpack.c.bf16 %v1536_v58, %v1535_v57  ;;  %v1487_v62 = vld [vmem:[#allocation8 + $0x60] sm:$0xff] }
 0x227   : > { %v2429_v1 = vpack.c.bf16 %v1488_v63, %v1487_v62 }
 0x229   : > { %2410 = vmatpush3.bf16.msra.mxu0 %v2409_v5  ;;  %2442 = vmatpush3.bf16.msra.mxu1 %v2441_v6  ;;  %v1506_v5 = vld [vmem:[#allocation8 + $0xf8] sm:$0xff]  ;;  %v1537_v6 = vld [vmem:[#allocation8 + $0x1f0] sm:$0xff] }
 0x22a   : > { %2412 = vmatprep.subr.bf16.mxu0 %v2411_v9  ;;  %2444 = vmatprep.subr.bf16.mxu1 %v2443_v10  ;;  %v2431_v7 = vpack.c.bf16 %v1506_v5, %v1505_v4  ;;  %v1489_v9 = vld [vmem:[#allocation8 + $0x70] sm:$0xff]  ;;  %v1490_v10 = vld [vmem:[#allocation8 + $0x78] sm:$0xff]  ;;  %v2463_v16 = vpack.c.bf16 %v1538_v8, %v1537_v6 }
 0x22b   : > { %v2433_v17 = vpack.c.bf16 %v1490_v10, %v1489_v9 }
 0x22d   : > { %2414 = vmatpush3.bf16.msra.mxu0 %v2413_v24  ;;  %2446 = vmatpush3.bf16.msra.mxu1 %v2445_v25  ;;  %v1170_v24 = vrot.slane %v1165_v21, %v603_v12  ;;  %v1178_v25 = vrot.slane %v1165_v21, %v611_v23 }
 0x22e   : > { %2416 = vmatprep.subr.bf16.mxu0 %v2415_v28  ;;  %2448 = vmatprep.subr.bf16.mxu1 %v2447_v29 }
 0x231   : > { %2418 = vmatpush3.bf16.msra.mxu0 %v2417_v36  ;;  %2450 = vmatpush3.bf16.msra.mxu1 %v2449_v37 }
 0x232   : > { %2420 = vmatprep.subr.bf16.mxu0 %v2419_v40  ;;  %2452 = vmatprep.subr.bf16.mxu1 %v2451_v41 }
 0x235   : > { %2422 = vmatpush3.bf16.msra.mxu0 %v2421_v48  ;;  %2454 = vmatpush3.bf16.msra.mxu1 %v2453_v49 }
 0x236   : > { %2424 = vmatprep.subr.bf16.mxu0 %v2423_v51  ;;  %2456 = vmatprep.subr.bf16.mxu1 %v2455_v52 }
 0x239   : > { %2426 = vmatpush3.bf16.msra.mxu0 %v2425_v59  ;;  %2458 = vmatpush3.bf16.msra.mxu1 %v2457_v60 }
 0x23a   : > { %2428 = vmatprep.subr.bf16.mxu0 %v2427_v61  ;;  %2460 = vmatprep.subr.bf16.mxu1 %v2459_v22 }
 0x23d   : > { %2430 = vmatpush3.bf16.msra.mxu0 %v2429_v1  ;;  %2462 = vmatpush3.bf16.msra.mxu1 %v2461_v3 }
 0x23e   : > { %2432 = vmatprep.subr.bf16.mxu0 %v2431_v7  ;;  %2464 = vmatprep.subr.bf16.mxu1 %v2463_v16 }
 0x241   : > { %2434 = vmatpush3.bf16.msra.mxu0 %v2433_v17  ;;  %2466 = vmatpush3.bf16.msra.mxu1 %v2465_v20 }
 0x2f7   : > { %v1324_v28 = vpop.f32.mrb[2].mxu0  ;;  %v1466_v29 = vpop.f32.mrb[2].mxu1 }
 0x2f8   : > { %v2471_v30 = vadd.f32 %v1324_v28, %v1170_v24  ;;  %v2473_v31 = vadd.f32 %v1466_v29, %v1178_v25  ;;  %v1326_v32 = vpop.f32.mrb[3].mxu0  ;;  %v1468_v33 = vpop.f32.mrb[3].mxu1 }
 0x2f9   : > { %v2472_v34 = vadd.f32 %v1326_v32, %v1174_v26  ;;  %v2474_v35 = vadd.f32 %v1468_v33, %v1182_v27 }
 0x2fa   : > { %v1471_v37 = vmax.f32 %v2471_v30, 0.0  ;;  %v1473_v23 = vmax.f32 %v2473_v31, 0.0 }
 0x2fb   : > { %v1472_v36 = vmax.f32 %v2472_v34, 0.0  ;;  %v1474_v12 = vmax.f32 %v2474_v35, 0.0 }
 0x2fd   : > { %1610 = vmatprep.mubr.f32.mxu0 %v1472_v36  ;;  %1680 = vmatprep.mubr.f32.mxu1 %v1474_v12 }
 0x2fe   : > { %1611 = vmatmul.mubr.f32.vlgmr.msra.gmra.mrb[4].mxu0 %v1471_v37  ;;  %1681 = vmatmul.mubr.f32.vlgmr.msra.gmra.mrb[4].mxu1 %v1473_v23 }
 0x3d1   : > { %v1853_v11 = vpop.f32.mrb[4].mxu0  ;;  %v1888_v14 = vpop.f32.mrb[4].mxu1 }
 0x3d2   : > { %v1854_v38 = vpop.f32.mrb[5].mxu0  ;;  %v1889_v39 = vpop.f32.mrb[5].mxu1 }
 0x3d3   : > { %v1855_v40 = vadd.f32 %v1854_v38, %v1853_v11  ;;  %v1890_v41 = vadd.f32 %v1889_v39, %v1888_v14 }
 0x3d5   : > { %v1613_v42 = vadd.f32 %v1855_v40, %v1815_v15 }
 0x3d7   : > { %v1683_v43 = vadd.f32 %v1890_v41, %v1613_v42 }
 0x3d9   : > { %1686 = vst [vmem:[%s338_s29] sm:$0xff] %v1683_v43 }
 0x3da   : > { %2691 = shalt.err (!%p2688_p4)
}
 0x3db   : > { %s2692_s15 = scalar_lea.hbm %s3060_s21, 128  ;;  %s2696_s13 = scalar_lea.hbm %s3111_s7, 256 }
 0x3dc   : > { %p2693_p0 = scmp.ne.s32.totalorder %s3060_s21, %s2692_s15  ;;  %p2697_p8 = scmp.lt.u32.totalorder %s3060_s21, %s3111_s7 }
 0x3dd   : > { %p2698_p13 = scmp.lt.u32.totalorder %s2696_s13, %s2692_s15  ;;  %p2700_p10 = scmp.lt.u32.totalorder %s2692_s15, %s3060_s21 }
 0x3de   : > { %p2694_p9 = pnand %p2693_p0, %p2948_p5 }
 0x3df   : > { %p2699_p6 = por %p2698_p13, %p2697_p8 }
 0x3e0   : > { %p2695_p11 = pneg %p2694_p9 }
 0x3e1   : > { %p2701_p3 = por %p2700_p10, %p2699_p6 }
 0x3e3   : > { %p2702_p7 = pnand %p2701_p3, %p2695_p11 }
 0x3e5   : > { %2705 = shalt.err (!%p2702_p7)
}
 0x3e6   : > { %2497 = dma.vmem_to_hbm [thread:$0]  (%p2948_p5), %s3062_s11, 128, %s3060_s21, %s1688_s16  }
 0x3e7 PF: > { %s3131_s29 = sld [smem:[#allocation15_spill]]  ;;  %s1713_s17 = sand.u32 1, %s2740_s24  }
 0x3e8   : > { %p3133_p2 = scmp.ge.s32.totalorder %s2752_s27, 2  ;;  %s1714_s18 = scalar_lea.sflag [#allocation4], %s1713_s17 }
 0x3ed   : > { %p3132_p12 = scmp.ne.s32.totalorder %s3131_s29, 0 }
 0x3ef   : > { %p2514_p1 = pnand %p3133_p2, %p3132_p12 }
 0x3f1   : > { %2735 = dma.done.wait (!%p2514_p1), %s1714_s18, 128  }
 0x3f2   : > { %2737 = vsyncadd (!%p2514_p1), %s1714_s18, 4294967168  ;;  %p22_p4 = scmp.ge.s32.totalorder %s2934_s8, 4   ;;  %s3134_s24 = smov %s2744_s25 }
 0x3f3   : > { %s3135_s25 = smov %s2748_s26  ;;  %s3136_s26 = smov %s2944_s19 }
 0x3f4   : > { %s3137_s27 = smov %s2934_s8  ;;  %24 = sbr.rel (!%p22_p4) target bundleno = 7 (0x7), region = 105 }
 0x3fb   :  { %1719 = vsyncpa [#allocation3], 1 }
 0x3fc   :  { %1721 = vsyncpa [#allocation3 + $0x1], 1 }
 0x3fd   :  { %1722 = vsyncpa [#allocation6], 1 }
 0x3fe   :  { %1723 = vsyncpa [#allocation9], 1 }
 0x3ff   :  { %1724 = vsyncpa [#allocation4], 1 }
 0x400   :  { %1726 = vsyncpa [#allocation4 + $0x1], 1 }

</bundles_post_ra>
